<compile_context>
chip_gen: v6e
topology: v6e:2x2x1
jax: 0.10.0
libtpu: 0.0.40
codegen_flags: <defaults>
</compile_context>

<pallas_src>
import functools

import jax
import jax.numpy as jnp
from jax.experimental import pallas as pl
from jax.experimental.pallas import tpu as pltpu

EPS = 1e-8  # GlobLN epsilon (asteroid default)


def conv1d_block_kernel(
    x_ref,            # (B_BLK, C_in, T)       input block
    w_in_ref,         # (HID, C_in)  bf16      1x1 in-conv weight
    b_in_ref,         # (HID, 1)     f32
    alpha_ref,        # (2,)         f32 SMEM  PReLU alphas (num_parameters=1 each)
    g1_ref, be1_ref,  # (HID, 1)     f32       GlobLN #1 gamma / beta
    w_d_ref,          # (HID, K)     f32       depthwise conv weight (groups=HID)
    b_d_ref,          # (HID, 1)     f32
    g2_ref, be2_ref,  # (HID, 1)     f32       GlobLN #2 gamma / beta
    w_rs_ref,         # (C_in+SKIP, HID) bf16  stacked [res; skip] 1x1 weights
    b_rs_ref,         # (C_in+SKIP, 1)   f32   stacked [res; skip] biases
    res_ref,          # (B_BLK, C_in, T)  output
    skip_ref,         # (B_BLK, SKIP, T)  output
    *, T, K, PAD, DIL, C_IN,
):
    b_blk = x_ref.shape[0]
    hid = w_in_ref.shape[0]
    inv_n = 1.0 / (hid * T)

    # ---- shared parameters: loaded once per grid step ----
    w_in = w_in_ref[...]          # (HID, C_in) bf16
    b_in = b_in_ref[...]          # (HID, 1)    f32
    a1 = alpha_ref[0]
    a2 = alpha_ref[1]
    g1, be1 = g1_ref[...], be1_ref[...]
    g2, be2 = g2_ref[...], be2_ref[...]
    w_d = w_d_ref[...]            # (HID, K)
    b_d = b_d_ref[...]            # (HID, 1)
    w_rs = w_rs_ref[...]          # (C_in+SKIP, HID) bf16
    b_rs = b_rs_ref[...]          # (C_in+SKIP, 1)   f32

    # Depthwise-conv tap shifts + lane edge-masks, built ONCE per grid step
    # (broadcast_in_dim is not CSE'd -> do not regenerate per sample / per tap).
    lane = jax.lax.broadcasted_iota(jnp.int32, (1, T), 1)
    shifts = [k * DIL - PAD for k in range(K)]
    masks = {s: (lane + s >= 0) & (lane + s < T) for s in shifts if s != 0}

    def _sum_all(a):  # (HID, T) -> (1, 1)
        return jnp.sum(jnp.sum(a, axis=1, keepdims=True), axis=0, keepdims=True)

    def glob_ln(v, g, be):
        # Single-pass stats (sum & sum of squares).  NOTE: E[y^2]-m^2 is slightly
        # less numerically stable than the two-pass form; fine at this tolerance.
        s1 = _sum_all(v)
        s2 = _sum_all(v * v)
        m = s1 * inv_n
        var = s2 * inv_n - m * m
        rstd = jax.lax.rsqrt(var + EPS)          # EUP slot
        scale = g * rstd                          # (HID, 1) per-channel scale
        off = be - m * scale                      # (HID, 1) per-channel offset
        return v * scale + off                    # 2 VALU ops / element

    # Samples are fully independent -> static unroll keeps every matmul a plain
    # 2-D MXU matmul (no batched dot_general, no weight broadcasts, no transposes).
    for i in range(b_blk):
        x = x_ref[i].astype(jnp.bfloat16)                        # (C_in, T)

        # ---- 1x1 conv in_chan -> hid_chan (MXU, bf16 in / f32 acc) ----
        y = jnp.dot(w_in, x, preferred_element_type=jnp.float32) + b_in
        y = jnp.where(y >= 0.0, y, a1 * y)                       # PReLU #1
        y = glob_ln(y, g1, be1)                                  # GlobLN #1

        # ---- depthwise dilated conv, "same" zero padding, in registers ----
        # out[c, t] = sum_k w_d[c, k] * y[c, t + k*DIL - PAD]   (zero outside [0, T))
        acc = None
        for k in range(K):                                       # K small & static
            s = shifts[k]
            if s == 0:
                z = y
            else:
                # rolled[t] = y[(t + s) % T]; mask off the wrapped-around lanes.
                z = jnp.where(masks[s], pltpu.roll(y, (-s) % T, 1), 0.0)
            term = w_d[:, k:k + 1] * z
            acc = term if acc is None else acc + term
        y = acc + b_d

        y = jnp.where(y >= 0.0, y, a2 * y)                       # PReLU #2
        y = glob_ln(y, g2, be2)                                  # GlobLN #2

        # ---- fused res + skip 1x1 convs: one MXU matmul on stacked weights ----
        out = jnp.dot(w_rs, y.astype(jnp.bfloat16),
                      preferred_element_type=jnp.float32) + b_rs
        res_ref[i] = out[:C_IN, :].astype(res_ref.dtype)
        skip_ref[i] = out[C_IN:, :].astype(skip_ref.dtype)


def prepare_params(w_in, b_in, alpha1, alpha2, g1, be1, w_d, b_d, g2, be2,
                   w_res, b_res, w_skip, b_skip):
    """One-time cast / reshape / stacking of PyTorch-layout parameters."""
    col = lambda v: v.reshape(-1, 1).astype(jnp.float32)
    w_rs = jnp.concatenate([w_res, w_skip], axis=0).astype(jnp.bfloat16)
    b_rs = jnp.concatenate([b_res, b_skip], axis=0).reshape(-1, 1).astype(jnp.float32)
    return (
        w_in.astype(jnp.bfloat16), col(b_in),
        jnp.asarray([alpha1, alpha2], jnp.float32),
        col(g1), col(be1),
        w_d.astype(jnp.float32), col(b_d),
        col(g2), col(be2),
        w_rs, b_rs,
    )


def _pick_batch_block(batch, max_blk=8):
    for cand in range(min(batch, max_blk), 0, -1):
        if batch % cand == 0:
            return cand
    return 1


def conv1d_block(x, prepared, *, kernel_size, padding, dilation, batch_block=None):
    """x: (B, in_chan, T) float32.  Returns (res, skip)."""
    (w_in, b_in, alphas, g1, be1, w_d, b_d, g2, be2, w_rs, b_rs) = prepared
    B, c_in, T = x.shape
    hid = w_in.shape[0]
    out_ch = w_rs.shape[0]
    skip_ch = out_ch - c_in
    # Non-causal "same" conv: output length must equal T for this fused block.
    assert 2 * padding == dilation * (kernel_size - 1)
    assert padding < T

    b_blk = batch_block or _pick_batch_block(B)
    assert B % b_blk == 0

    def wspec(shape):
        n = len(shape)
        return pl.BlockSpec(shape, lambda b, _n=n: (0,) * _n)

    in_specs = [
        pl.BlockSpec((b_blk, c_in, T), lambda b: (b, 0, 0)),      # x
        wspec((hid, c_in)), wspec((hid, 1)),                      # w_in, b_in
        pl.BlockSpec(memory_space=pltpu.MemorySpace.SMEM),        # PReLU alphas
        wspec((hid, 1)), wspec((hid, 1)),                         # gamma1, beta1
        wspec((hid, kernel_size)), wspec((hid, 1)),               # w_depth, b_depth
        wspec((hid, 1)), wspec((hid, 1)),                         # gamma2, beta2
        wspec((out_ch, hid)), wspec((out_ch, 1)),                 # stacked res|skip w, b
    ]
    out_specs = (
        pl.BlockSpec((b_blk, c_in, T), lambda b: (b, 0, 0)),
        pl.BlockSpec((b_blk, skip_ch, T), lambda b: (b, 0, 0)),
    )

    kernel = functools.partial(
        conv1d_block_kernel,
        T=T, K=kernel_size, PAD=padding, DIL=dilation, C_IN=c_in,
    )

    res, skip = pl.pallas_call(
        kernel,
        grid=(B // b_blk,),
        in_specs=in_specs,
        out_specs=out_specs,
        out_shape=(
            jax.ShapeDtypeStruct((B, c_in, T), jnp.float32),
            jax.ShapeDtypeStruct((B, skip_ch, T), jnp.float32),
        ),
        compiler_params=pltpu.CompilerParams(dimension_semantics=("parallel",)),
    )(x.astype(jnp.float32), w_in, b_in, alphas, g1, be1, w_d, b_d, g2, be2, w_rs, b_rs)
    return res, skip


def ref_forward(x, raw_params, *, kernel_size, padding, dilation):
    """Pure-JAX f32 reference matching PyTorch semantics (NCL layout)."""
    (w_in, b_in, alpha1, alpha2, g1, be1, w_d, b_d, g2, be2,
     w_res, b_res, w_skip, b_skip) = raw_params
    T = x.shape[-1]

    def glob_ln(y, g, b):
        m = y.mean(axis=(1, 2), keepdims=True)
        v = ((y - m) ** 2).mean(axis=(1, 2), keepdims=True)
        return g[None, :, None] * ((y - m) / jnp.sqrt(v + EPS)) + b[None, :, None]

    y = jnp.einsum("hc,bct->bht", w_in, x) + b_in[None, :, None]
    y = jnp.where(y >= 0, y, alpha1 * y)
    y = glob_ln(y, g1, be1)
    ypad = jnp.pad(y, ((0, 0), (0, 0), (padding, padding)))
    yd = sum(
        w_d[None, :, k, None] * ypad[:, :, k * dilation:k * dilation + T]
        for k in range(kernel_size)
    ) + b_d[None, :, None]
    y = jnp.where(yd >= 0, yd, alpha2 * yd)
    y = glob_ln(y, g2, be2)
    res = jnp.einsum("ch,bht->bct", w_res, y) + b_res[None, :, None]
    skip = jnp.einsum("sh,bht->bst", w_skip, y) + b_skip[None, :, None]
    return res, skip


if __name__ == "__main__":
    # Module hyper-parameters (small, non-causal "same"-length config).
    B, C_IN, HID, SKIP, T = 2, 16, 64, 32, 128
    K, DIL = 3, 2
    PAD = DIL * (K - 1) // 2  # = 2  -> output length == T

    key = jax.random.PRNGKey(0)
    ks = jax.random.split(key, 12)

    # Deterministic synthetic parameters (shapes from Conv1DBlock.__init__).
    w_in = 0.1 * jax.random.normal(ks[0], (HID, C_IN), jnp.float32)
    b_in = 0.1 * jax.random.normal(ks[1], (HID,), jnp.float32)
    alpha1 = jnp.float32(0.25)  # PReLU default init
    alpha2 = jnp.float32(0.25)
    g1 = 1.0 + 0.1 * jax.random.normal(ks[2], (HID,), jnp.float32)
    be1 = 0.1 * jax.random.normal(ks[3], (HID,), jnp.float32)
    w_d = 0.1 * jax.random.normal(ks[4], (HID, K), jnp.float32)  # depthwise (HID,1,K)->(HID,K)
    b_d = 0.1 * jax.random.normal(ks[5], (HID,), jnp.float32)
    g2 = 1.0 + 0.1 * jax.random.normal(ks[6], (HID,), jnp.float32)
    be2 = 0.1 * jax.random.normal(ks[7], (HID,), jnp.float32)
    w_res = 0.1 * jax.random.normal(ks[8], (C_IN, HID), jnp.float32)
    b_res = 0.1 * jax.random.normal(ks[9], (C_IN,), jnp.float32)
    w_skip = 0.1 * jax.random.normal(ks[10], (SKIP, HID), jnp.float32)
    b_skip = 0.1 * jax.random.normal(ks[11], (SKIP,), jnp.float32)

    raw = (w_in, b_in, alpha1, alpha2, g1, be1, w_d, b_d, g2, be2,
           w_res, b_res, w_skip, b_skip)
    prepared = prepare_params(*raw)  # cast / stack once, not per forward call

    x = jax.random.normal(jax.random.PRNGKey(42), (B, C_IN, T), jnp.float32)

    fwd = jax.jit(functools.partial(
        conv1d_block, kernel_size=K, padding=PAD, dilation=DIL))
    res, skip = fwd(x, prepared)
    jax.block_until_ready((res, skip))

    res_ref, skip_ref = ref_forward(x, raw, kernel_size=K, padding=PAD, dilation=DIL)
    assert res.shape == (B, C_IN, T) and skip.shape == (B, SKIP, T)
    # bf16 MXU operands (f32 accumulation) introduce ~1e-3..1e-2 deviation vs pure-f32 ref.
    assert jnp.allclose(res, res_ref, atol=2e-2, rtol=2e-2)
    assert jnp.allclose(skip, skip_ref, atol=2e-2, rtol=2e-2)

    print("KERNEL_OK")
</pallas_src>

<mosaic_0001>
module attributes {stable_mosaic.version = 11 : i64} {
  func.func @conv1d_block_kernel(%arg0: i32, %arg1: memref<2x16x128xf32, #tpu.memory_space<vmem>>, %arg2: memref<64x16xbf16, #tpu.memory_space<vmem>>, %arg3: memref<64x1xf32, #tpu.memory_space<vmem>>, %arg4: memref<2xf32, #tpu.memory_space<smem>>, %arg5: memref<64x1xf32, #tpu.memory_space<vmem>>, %arg6: memref<64x1xf32, #tpu.memory_space<vmem>>, %arg7: memref<64x3xf32, #tpu.memory_space<vmem>>, %arg8: memref<64x1xf32, #tpu.memory_space<vmem>>, %arg9: memref<64x1xf32, #tpu.memory_space<vmem>>, %arg10: memref<64x1xf32, #tpu.memory_space<vmem>>, %arg11: memref<48x64xbf16, #tpu.memory_space<vmem>>, %arg12: memref<48x1xf32, #tpu.memory_space<vmem>>, %arg13: memref<2x16x128xf32, #tpu.memory_space<vmem>>, %arg14: memref<2x32x128xf32, #tpu.memory_space<vmem>>) attributes {dimension_semantics = [#tpu.dimension_semantics<parallel>], iteration_bounds = array<i64: 1>, scalar_prefetch = 0 : i64, scratch_operands = 0 : i64, tpu.core_type = #tpu.core_type<tc>, window_params = [{transform_indices = @transform_0, window_bounds = array<i64: 2, 16, 128>}, {pipeline_mode = #tpu.pipeline_mode<synchronous>, transform_indices = @transform_1, window_bounds = array<i64: 64, 16>}, {pipeline_mode = #tpu.pipeline_mode<synchronous>, transform_indices = @transform_2, window_bounds = array<i64: 64, 1>}, {transform_indices = @transform_3, window_bounds = array<i64: 2>}, {pipeline_mode = #tpu.pipeline_mode<synchronous>, transform_indices = @transform_4, window_bounds = array<i64: 64, 1>}, {pipeline_mode = #tpu.pipeline_mode<synchronous>, transform_indices = @transform_5, window_bounds = array<i64: 64, 1>}, {pipeline_mode = #tpu.pipeline_mode<synchronous>, transform_indices = @transform_6, window_bounds = array<i64: 64, 3>}, {pipeline_mode = #tpu.pipeline_mode<synchronous>, transform_indices = @transform_7, window_bounds = array<i64: 64, 1>}, {pipeline_mode = #tpu.pipeline_mode<synchronous>, transform_indices = @transform_8, window_bounds = array<i64: 64, 1>}, {pipeline_mode = #tpu.pipeline_mode<synchronous>, transform_indices = @transform_9, window_bounds = array<i64: 64, 1>}, {pipeline_mode = #tpu.pipeline_mode<synchronous>, transform_indices = @transform_10, window_bounds = array<i64: 48, 64>}, {pipeline_mode = #tpu.pipeline_mode<synchronous>, transform_indices = @transform_11, window_bounds = array<i64: 48, 1>}, {transform_indices = @transform_12, window_bounds = array<i64: 2, 16, 128>}, {transform_indices = @transform_13, window_bounds = array<i64: 2, 32, 128>}]} {
    %c0 = arith.constant 0 : index
    %c0_0 = arith.constant 0 : index
    %0 = vector.load %arg2[%c0, %c0_0] : memref<64x16xbf16, #tpu.memory_space<vmem>>, vector<64x16xbf16>
    %c0_1 = arith.constant 0 : index
    %c0_2 = arith.constant 0 : index
    %1 = vector.load %arg3[%c0_1, %c0_2] : memref<64x1xf32, #tpu.memory_space<vmem>>, vector<64x1xf32>
    %c0_3 = arith.constant 0 : index
    %2 = memref.load %arg4[%c0_3] : memref<2xf32, #tpu.memory_space<smem>>
    %c1 = arith.constant 1 : index
    %3 = memref.load %arg4[%c1] : memref<2xf32, #tpu.memory_space<smem>>
    %c0_4 = arith.constant 0 : index
    %c0_5 = arith.constant 0 : index
    %4 = vector.load %arg5[%c0_4, %c0_5] : memref<64x1xf32, #tpu.memory_space<vmem>>, vector<64x1xf32>
    %c0_6 = arith.constant 0 : index
    %c0_7 = arith.constant 0 : index
    %5 = vector.load %arg6[%c0_6, %c0_7] : memref<64x1xf32, #tpu.memory_space<vmem>>, vector<64x1xf32>
    %c0_8 = arith.constant 0 : index
    %c0_9 = arith.constant 0 : index
    %6 = vector.load %arg9[%c0_8, %c0_9] : memref<64x1xf32, #tpu.memory_space<vmem>>, vector<64x1xf32>
    %c0_10 = arith.constant 0 : index
    %c0_11 = arith.constant 0 : index
    %7 = vector.load %arg10[%c0_10, %c0_11] : memref<64x1xf32, #tpu.memory_space<vmem>>, vector<64x1xf32>
    %c0_12 = arith.constant 0 : index
    %c0_13 = arith.constant 0 : index
    %8 = vector.load %arg7[%c0_12, %c0_13] : memref<64x3xf32, #tpu.memory_space<vmem>>, vector<64x3xf32>
    %c0_14 = arith.constant 0 : index
    %c0_15 = arith.constant 0 : index
    %9 = vector.load %arg8[%c0_14, %c0_15] : memref<64x1xf32, #tpu.memory_space<vmem>>, vector<64x1xf32>
    %c0_16 = arith.constant 0 : index
    %c0_17 = arith.constant 0 : index
    %10 = vector.load %arg11[%c0_16, %c0_17] : memref<48x64xbf16, #tpu.memory_space<vmem>>, vector<48x64xbf16>
    %c0_18 = arith.constant 0 : index
    %c0_19 = arith.constant 0 : index
    %11 = vector.load %arg12[%c0_18, %c0_19] : memref<48x1xf32, #tpu.memory_space<vmem>>, vector<48x1xf32>
    %12 = tpu.iota {dimensions = array<i32: 1>} : vector<1x128xi32>
    %c-2_i32 = arith.constant -2 : i32
    %13 = vector.broadcast %c-2_i32 : i32 to vector<1x128xi32>
    %14 = arith.addi %12, %13 : vector<1x128xi32>
    %c0_i32 = arith.constant 0 : i32
    %15 = vector.broadcast %c0_i32 : i32 to vector<1x128xi32>
    %16 = arith.cmpi sge, %14, %15 : vector<1x128xi32>
    %c-2_i32_20 = arith.constant -2 : i32
    %17 = vector.broadcast %c-2_i32_20 : i32 to vector<1x128xi32>
    %18 = arith.addi %12, %17 : vector<1x128xi32>
    %c128_i32 = arith.constant 128 : i32
    %19 = vector.broadcast %c128_i32 : i32 to vector<1x128xi32>
    %20 = arith.cmpi slt, %18, %19 : vector<1x128xi32>
    %21 = arith.andi %16, %20 : vector<1x128xi1>
    %c2_i32 = arith.constant 2 : i32
    %22 = vector.broadcast %c2_i32 : i32 to vector<1x128xi32>
    %23 = arith.addi %12, %22 : vector<1x128xi32>
    %c0_i32_21 = arith.constant 0 : i32
    %24 = vector.broadcast %c0_i32_21 : i32 to vector<1x128xi32>
    %25 = arith.cmpi sge, %23, %24 : vector<1x128xi32>
    %c2_i32_22 = arith.constant 2 : i32
    %26 = vector.broadcast %c2_i32_22 : i32 to vector<1x128xi32>
    %27 = arith.addi %12, %26 : vector<1x128xi32>
    %c128_i32_23 = arith.constant 128 : i32
    %28 = vector.broadcast %c128_i32_23 : i32 to vector<1x128xi32>
    %29 = arith.cmpi slt, %27, %28 : vector<1x128xi32>
    %30 = arith.andi %25, %29 : vector<1x128xi1>
    %c0_24 = arith.constant 0 : index
    %c0_25 = arith.constant 0 : index
    %c0_26 = arith.constant 0 : index
    %31 = vector.load %arg1[%c0_24, %c0_25, %c0_26] : memref<2x16x128xf32, #tpu.memory_space<vmem>>, vector<1x16x128xf32>
    %32 = vector.shape_cast %31 : vector<1x16x128xf32> to vector<16x128xf32>
    %33 = arith.truncf %32 : vector<16x128xf32> to vector<16x128xbf16>
    %cst = arith.constant dense<0.000000e+00> : vector<64x128xf32>
    %34 = tpu.matmul %0, %33, %cst {dimension_numbers = #tpu.dot_dimension_numbers<[1], [0], [0], [1], [0, 0, 1, 1], [], []>} : vector<64x16xbf16>, vector<16x128xbf16>, vector<64x128xf32> -> vector<64x128xf32>
    %35 = vector.broadcast %1 : vector<64x1xf32> to vector<64x128xf32>
    %36 = arith.addf %34, %35 : vector<64x128xf32>
    %cst_27 = arith.constant 0.000000e+00 : f32
    %37 = vector.broadcast %cst_27 : f32 to vector<64x128xf32>
    %38 = arith.cmpf oge, %36, %37 : vector<64x128xf32>
    %39 = vector.broadcast %2 : f32 to vector<64x128xf32>
    %40 = arith.mulf %39, %36 : vector<64x128xf32>
    %41 = arith.select %38, %36, %40 : vector<64x128xi1>, vector<64x128xf32>
    %cst_28 = arith.constant dense<0.000000e+00> : vector<64xf32>
    %42 = vector.multi_reduction <add>, %41, %cst_28 [1] : vector<64x128xf32> to vector<64xf32>
    %43 = vector.shape_cast %42 : vector<64xf32> to vector<64x1xf32>
    %cst_29 = arith.constant dense<0.000000e+00> : vector<1xf32>
    %44 = vector.multi_reduction <add>, %43, %cst_29 [0] : vector<64x1xf32> to vector<1xf32>
    %45 = vector.shape_cast %44 : vector<1xf32> to vector<1x1xf32>
    %46 = arith.mulf %41, %41 : vector<64x128xf32>
    %cst_30 = arith.constant dense<0.000000e+00> : vector<64xf32>
    %47 = vector.multi_reduction <add>, %46, %cst_30 [1] : vector<64x128xf32> to vector<64xf32>
    %48 = vector.shape_cast %47 : vector<64xf32> to vector<64x1xf32>
    %cst_31 = arith.constant dense<0.000000e+00> : vector<1xf32>
    %49 = vector.multi_reduction <add>, %48, %cst_31 [0] : vector<64x1xf32> to vector<1xf32>
    %50 = vector.shape_cast %49 : vector<1xf32> to vector<1x1xf32>
    %cst_32 = arith.constant 1.22070313E-4 : f32
    %51 = vector.broadcast %cst_32 : f32 to vector<1x1xf32>
    %52 = arith.mulf %45, %51 : vector<1x1xf32>
    %cst_33 = arith.constant 1.22070313E-4 : f32
    %53 = vector.broadcast %cst_33 : f32 to vector<1x1xf32>
    %54 = arith.mulf %50, %53 : vector<1x1xf32>
    %55 = arith.mulf %52, %52 : vector<1x1xf32>
    %56 = arith.subf %54, %55 : vector<1x1xf32>
    %cst_34 = arith.constant 9.99999993E-9 : f32
    %57 = vector.broadcast %cst_34 : f32 to vector<1x1xf32>
    %58 = arith.addf %56, %57 : vector<1x1xf32>
    %59 = math.rsqrt %58 : vector<1x1xf32>
    %60 = vector.broadcast %59 : vector<1x1xf32> to vector<64x1xf32>
    %61 = arith.mulf %4, %60 : vector<64x1xf32>
    %62 = vector.broadcast %52 : vector<1x1xf32> to vector<64x1xf32>
    %63 = arith.mulf %62, %61 : vector<64x1xf32>
    %64 = arith.subf %5, %63 : vector<64x1xf32>
    %65 = vector.broadcast %61 : vector<64x1xf32> to vector<64x128xf32>
    %66 = arith.mulf %41, %65 : vector<64x128xf32>
    %67 = vector.broadcast %64 : vector<64x1xf32> to vector<64x128xf32>
    %68 = arith.addf %66, %67 : vector<64x128xf32>
    %c2_i32_35 = arith.constant 2 : i32
    %69 = tpu.dynamic_rotate %68 by %c2_i32_35 dim 1 : vector<64x128xf32>, i32 -> vector<64x128xf32>
    %cst_36 = arith.constant 0.000000e+00 : f32
    %70 = vector.shape_cast %21 : vector<1x128xi1> to vector<1x128xi1>
    %71 = vector.broadcast %70 : vector<1x128xi1> to vector<64x128xi1>
    %72 = vector.broadcast %cst_36 : f32 to vector<64x128xf32>
    %73 = arith.select %71, %69, %72 : vector<64x128xi1>, vector<64x128xf32>
    %74 = vector.extract_strided_slice %8 {offsets = [0, 0], sizes = [64, 1], strides = [1, 1]} : vector<64x3xf32> to vector<64x1xf32>
    %75 = vector.broadcast %74 : vector<64x1xf32> to vector<64x128xf32>
    %76 = arith.mulf %75, %73 : vector<64x128xf32>
    %77 = vector.extract_strided_slice %8 {offsets = [0, 1], sizes = [64, 1], strides = [1, 1]} : vector<64x3xf32> to vector<64x1xf32>
    %78 = vector.broadcast %77 : vector<64x1xf32> to vector<64x128xf32>
    %79 = arith.mulf %78, %68 : vector<64x128xf32>
    %80 = arith.addf %76, %79 : vector<64x128xf32>
    %c126_i32 = arith.constant 126 : i32
    %81 = tpu.dynamic_rotate %68 by %c126_i32 dim 1 : vector<64x128xf32>, i32 -> vector<64x128xf32>
    %cst_37 = arith.constant 0.000000e+00 : f32
    %82 = vector.shape_cast %30 : vector<1x128xi1> to vector<1x128xi1>
    %83 = vector.broadcast %82 : vector<1x128xi1> to vector<64x128xi1>
    %84 = vector.broadcast %cst_37 : f32 to vector<64x128xf32>
    %85 = arith.select %83, %81, %84 : vector<64x128xi1>, vector<64x128xf32>
    %86 = vector.extract_strided_slice %8 {offsets = [0, 2], sizes = [64, 1], strides = [1, 1]} : vector<64x3xf32> to vector<64x1xf32>
    %87 = vector.broadcast %86 : vector<64x1xf32> to vector<64x128xf32>
    %88 = arith.mulf %87, %85 : vector<64x128xf32>
    %89 = arith.addf %80, %88 : vector<64x128xf32>
    %90 = vector.broadcast %9 : vector<64x1xf32> to vector<64x128xf32>
    %91 = arith.addf %89, %90 : vector<64x128xf32>
    %cst_38 = arith.constant 0.000000e+00 : f32
    %92 = vector.broadcast %cst_38 : f32 to vector<64x128xf32>
    %93 = arith.cmpf oge, %91, %92 : vector<64x128xf32>
    %94 = vector.broadcast %3 : f32 to vector<64x128xf32>
    %95 = arith.mulf %94, %91 : vector<64x128xf32>
    %96 = arith.select %93, %91, %95 : vector<64x128xi1>, vector<64x128xf32>
    %cst_39 = arith.constant dense<0.000000e+00> : vector<64xf32>
    %97 = vector.multi_reduction <add>, %96, %cst_39 [1] : vector<64x128xf32> to vector<64xf32>
    %98 = vector.shape_cast %97 : vector<64xf32> to vector<64x1xf32>
    %cst_40 = arith.constant dense<0.000000e+00> : vector<1xf32>
    %99 = vector.multi_reduction <add>, %98, %cst_40 [0] : vector<64x1xf32> to vector<1xf32>
    %100 = vector.shape_cast %99 : vector<1xf32> to vector<1x1xf32>
    %101 = arith.mulf %96, %96 : vector<64x128xf32>
    %cst_41 = arith.constant dense<0.000000e+00> : vector<64xf32>
    %102 = vector.multi_reduction <add>, %101, %cst_41 [1] : vector<64x128xf32> to vector<64xf32>
    %103 = vector.shape_cast %102 : vector<64xf32> to vector<64x1xf32>
    %cst_42 = arith.constant dense<0.000000e+00> : vector<1xf32>
    %104 = vector.multi_reduction <add>, %103, %cst_42 [0] : vector<64x1xf32> to vector<1xf32>
    %105 = vector.shape_cast %104 : vector<1xf32> to vector<1x1xf32>
    %cst_43 = arith.constant 1.22070313E-4 : f32
    %106 = vector.broadcast %cst_43 : f32 to vector<1x1xf32>
    %107 = arith.mulf %100, %106 : vector<1x1xf32>
    %cst_44 = arith.constant 1.22070313E-4 : f32
    %108 = vector.broadcast %cst_44 : f32 to vector<1x1xf32>
    %109 = arith.mulf %105, %108 : vector<1x1xf32>
    %110 = arith.mulf %107, %107 : vector<1x1xf32>
    %111 = arith.subf %109, %110 : vector<1x1xf32>
    %cst_45 = arith.constant 9.99999993E-9 : f32
    %112 = vector.broadcast %cst_45 : f32 to vector<1x1xf32>
    %113 = arith.addf %111, %112 : vector<1x1xf32>
    %114 = math.rsqrt %113 : vector<1x1xf32>
    %115 = vector.broadcast %114 : vector<1x1xf32> to vector<64x1xf32>
    %116 = arith.mulf %6, %115 : vector<64x1xf32>
    %117 = vector.broadcast %107 : vector<1x1xf32> to vector<64x1xf32>
    %118 = arith.mulf %117, %116 : vector<64x1xf32>
    %119 = arith.subf %7, %118 : vector<64x1xf32>
    %120 = vector.broadcast %116 : vector<64x1xf32> to vector<64x128xf32>
    %121 = arith.mulf %96, %120 : vector<64x128xf32>
    %122 = vector.broadcast %119 : vector<64x1xf32> to vector<64x128xf32>
    %123 = arith.addf %121, %122 : vector<64x128xf32>
    %124 = arith.truncf %123 : vector<64x128xf32> to vector<64x128xbf16>
    %cst_46 = arith.constant dense<0.000000e+00> : vector<48x128xf32>
    %125 = tpu.matmul %10, %124, %cst_46 {dimension_numbers = #tpu.dot_dimension_numbers<[1], [0], [0], [1], [0, 0, 1, 1], [], []>} : vector<48x64xbf16>, vector<64x128xbf16>, vector<48x128xf32> -> vector<48x128xf32>
    %126 = vector.broadcast %11 : vector<48x1xf32> to vector<48x128xf32>
    %127 = arith.addf %125, %126 : vector<48x128xf32>
    %128 = vector.extract_strided_slice %127 {offsets = [0, 0], sizes = [16, 128], strides = [1, 1]} : vector<48x128xf32> to vector<16x128xf32>
    %c0_47 = arith.constant 0 : index
    %c0_48 = arith.constant 0 : index
    %c0_49 = arith.constant 0 : index
    %129 = vector.load %arg13[%c0_47, %c0_48, %c0_49] : memref<2x16x128xf32, #tpu.memory_space<vmem>>, vector<1x16x128xf32>
    %130 = vector.shape_cast %129 : vector<1x16x128xf32> to vector<16x128xf32>
    %131 = vector.shape_cast %128 : vector<16x128xf32> to vector<1x16x128xf32>
    tpu.vector_store %arg13[%c0_47, %c0_48, %c0_49], %131 {strides = array<i32>} : memref<2x16x128xf32, #tpu.memory_space<vmem>>, vector<1x16x128xf32>,
    %132 = vector.extract_strided_slice %127 {offsets = [16, 0], sizes = [32, 128], strides = [1, 1]} : vector<48x128xf32> to vector<32x128xf32>
    %c0_50 = arith.constant 0 : index
    %c0_51 = arith.constant 0 : index
    %c0_52 = arith.constant 0 : index
    %133 = vector.load %arg14[%c0_50, %c0_51, %c0_52] : memref<2x32x128xf32, #tpu.memory_space<vmem>>, vector<1x32x128xf32>
    %134 = vector.shape_cast %133 : vector<1x32x128xf32> to vector<32x128xf32>
    %135 = vector.shape_cast %132 : vector<32x128xf32> to vector<1x32x128xf32>
    tpu.vector_store %arg14[%c0_50, %c0_51, %c0_52], %135 {strides = array<i32>} : memref<2x32x128xf32, #tpu.memory_space<vmem>>, vector<1x32x128xf32>,
    %c1_53 = arith.constant 1 : index
    %c0_54 = arith.constant 0 : index
    %c0_55 = arith.constant 0 : index
    %136 = vector.load %arg1[%c1_53, %c0_54, %c0_55] : memref<2x16x128xf32, #tpu.memory_space<vmem>>, vector<1x16x128xf32>
    %137 = vector.shape_cast %136 : vector<1x16x128xf32> to vector<16x128xf32>
    %138 = arith.truncf %137 : vector<16x128xf32> to vector<16x128xbf16>
    %cst_56 = arith.constant dense<0.000000e+00> : vector<64x128xf32>
    %139 = tpu.matmul %0, %138, %cst_56 {dimension_numbers = #tpu.dot_dimension_numbers<[1], [0], [0], [1], [0, 0, 1, 1], [], []>} : vector<64x16xbf16>, vector<16x128xbf16>, vector<64x128xf32> -> vector<64x128xf32>
    %140 = vector.broadcast %1 : vector<64x1xf32> to vector<64x128xf32>
    %141 = arith.addf %139, %140 : vector<64x128xf32>
    %cst_57 = arith.constant 0.000000e+00 : f32
    %142 = vector.broadcast %cst_57 : f32 to vector<64x128xf32>
    %143 = arith.cmpf oge, %141, %142 : vector<64x128xf32>
    %144 = vector.broadcast %2 : f32 to vector<64x128xf32>
    %145 = arith.mulf %144, %141 : vector<64x128xf32>
    %146 = arith.select %143, %141, %145 : vector<64x128xi1>, vector<64x128xf32>
    %cst_58 = arith.constant dense<0.000000e+00> : vector<64xf32>
    %147 = vector.multi_reduction <add>, %146, %cst_58 [1] : vector<64x128xf32> to vector<64xf32>
    %148 = vector.shape_cast %147 : vector<64xf32> to vector<64x1xf32>
    %cst_59 = arith.constant dense<0.000000e+00> : vector<1xf32>
    %149 = vector.multi_reduction <add>, %148, %cst_59 [0] : vector<64x1xf32> to vector<1xf32>
    %150 = vector.shape_cast %149 : vector<1xf32> to vector<1x1xf32>
    %151 = arith.mulf %146, %146 : vector<64x128xf32>
    %cst_60 = arith.constant dense<0.000000e+00> : vector<64xf32>
    %152 = vector.multi_reduction <add>, %151, %cst_60 [1] : vector<64x128xf32> to vector<64xf32>
    %153 = vector.shape_cast %152 : vector<64xf32> to vector<64x1xf32>
    %cst_61 = arith.constant dense<0.000000e+00> : vector<1xf32>
    %154 = vector.multi_reduction <add>, %153, %cst_61 [0] : vector<64x1xf32> to vector<1xf32>
    %155 = vector.shape_cast %154 : vector<1xf32> to vector<1x1xf32>
    %cst_62 = arith.constant 1.22070313E-4 : f32
    %156 = vector.broadcast %cst_62 : f32 to vector<1x1xf32>
    %157 = arith.mulf %150, %156 : vector<1x1xf32>
    %cst_63 = arith.constant 1.22070313E-4 : f32
    %158 = vector.broadcast %cst_63 : f32 to vector<1x1xf32>
    %159 = arith.mulf %155, %158 : vector<1x1xf32>
    %160 = arith.mulf %157, %157 : vector<1x1xf32>
    %161 = arith.subf %159, %160 : vector<1x1xf32>
    %cst_64 = arith.constant 9.99999993E-9 : f32
    %162 = vector.broadcast %cst_64 : f32 to vector<1x1xf32>
    %163 = arith.addf %161, %162 : vector<1x1xf32>
    %164 = math.rsqrt %163 : vector<1x1xf32>
    %165 = vector.broadcast %164 : vector<1x1xf32> to vector<64x1xf32>
    %166 = arith.mulf %4, %165 : vector<64x1xf32>
    %167 = vector.broadcast %157 : vector<1x1xf32> to vector<64x1xf32>
    %168 = arith.mulf %167, %166 : vector<64x1xf32>
    %169 = arith.subf %5, %168 : vector<64x1xf32>
    %170 = vector.broadcast %166 : vector<64x1xf32> to vector<64x128xf32>
    %171 = arith.mulf %146, %170 : vector<64x128xf32>
    %172 = vector.broadcast %169 : vector<64x1xf32> to vector<64x128xf32>
    %173 = arith.addf %171, %172 : vector<64x128xf32>
    %c2_i32_65 = arith.constant 2 : i32
    %174 = tpu.dynamic_rotate %173 by %c2_i32_65 dim 1 : vector<64x128xf32>, i32 -> vector<64x128xf32>
    %cst_66 = arith.constant 0.000000e+00 : f32
    %175 = vector.shape_cast %21 : vector<1x128xi1> to vector<1x128xi1>
    %176 = vector.broadcast %175 : vector<1x128xi1> to vector<64x128xi1>
    %177 = vector.broadcast %cst_66 : f32 to vector<64x128xf32>
    %178 = arith.select %176, %174, %177 : vector<64x128xi1>, vector<64x128xf32>
    %179 = vector.extract_strided_slice %8 {offsets = [0, 0], sizes = [64, 1], strides = [1, 1]} : vector<64x3xf32> to vector<64x1xf32>
    %180 = vector.broadcast %179 : vector<64x1xf32> to vector<64x128xf32>
    %181 = arith.mulf %180, %178 : vector<64x128xf32>
    %182 = vector.extract_strided_slice %8 {offsets = [0, 1], sizes = [64, 1], strides = [1, 1]} : vector<64x3xf32> to vector<64x1xf32>
    %183 = vector.broadcast %182 : vector<64x1xf32> to vector<64x128xf32>
    %184 = arith.mulf %183, %173 : vector<64x128xf32>
    %185 = arith.addf %181, %184 : vector<64x128xf32>
    %c126_i32_67 = arith.constant 126 : i32
    %186 = tpu.dynamic_rotate %173 by %c126_i32_67 dim 1 : vector<64x128xf32>, i32 -> vector<64x128xf32>
    %cst_68 = arith.constant 0.000000e+00 : f32
    %187 = vector.shape_cast %30 : vector<1x128xi1> to vector<1x128xi1>
    %188 = vector.broadcast %187 : vector<1x128xi1> to vector<64x128xi1>
    %189 = vector.broadcast %cst_68 : f32 to vector<64x128xf32>
    %190 = arith.select %188, %186, %189 : vector<64x128xi1>, vector<64x128xf32>
    %191 = vector.extract_strided_slice %8 {offsets = [0, 2], sizes = [64, 1], strides = [1, 1]} : vector<64x3xf32> to vector<64x1xf32>
    %192 = vector.broadcast %191 : vector<64x1xf32> to vector<64x128xf32>
    %193 = arith.mulf %192, %190 : vector<64x128xf32>
    %194 = arith.addf %185, %193 : vector<64x128xf32>
    %195 = vector.broadcast %9 : vector<64x1xf32> to vector<64x128xf32>
    %196 = arith.addf %194, %195 : vector<64x128xf32>
    %cst_69 = arith.constant 0.000000e+00 : f32
    %197 = vector.broadcast %cst_69 : f32 to vector<64x128xf32>
    %198 = arith.cmpf oge, %196, %197 : vector<64x128xf32>
    %199 = vector.broadcast %3 : f32 to vector<64x128xf32>
    %200 = arith.mulf %199, %196 : vector<64x128xf32>
    %201 = arith.select %198, %196, %200 : vector<64x128xi1>, vector<64x128xf32>
    %cst_70 = arith.constant dense<0.000000e+00> : vector<64xf32>
    %202 = vector.multi_reduction <add>, %201, %cst_70 [1] : vector<64x128xf32> to vector<64xf32>
    %203 = vector.shape_cast %202 : vector<64xf32> to vector<64x1xf32>
    %cst_71 = arith.constant dense<0.000000e+00> : vector<1xf32>
    %204 = vector.multi_reduction <add>, %203, %cst_71 [0] : vector<64x1xf32> to vector<1xf32>
    %205 = vector.shape_cast %204 : vector<1xf32> to vector<1x1xf32>
    %206 = arith.mulf %201, %201 : vector<64x128xf32>
    %cst_72 = arith.constant dense<0.000000e+00> : vector<64xf32>
    %207 = vector.multi_reduction <add>, %206, %cst_72 [1] : vector<64x128xf32> to vector<64xf32>
    %208 = vector.shape_cast %207 : vector<64xf32> to vector<64x1xf32>
    %cst_73 = arith.constant dense<0.000000e+00> : vector<1xf32>
    %209 = vector.multi_reduction <add>, %208, %cst_73 [0] : vector<64x1xf32> to vector<1xf32>
    %210 = vector.shape_cast %209 : vector<1xf32> to vector<1x1xf32>
    %cst_74 = arith.constant 1.22070313E-4 : f32
    %211 = vector.broadcast %cst_74 : f32 to vector<1x1xf32>
    %212 = arith.mulf %205, %211 : vector<1x1xf32>
    %cst_75 = arith.constant 1.22070313E-4 : f32
    %213 = vector.broadcast %cst_75 : f32 to vector<1x1xf32>
    %214 = arith.mulf %210, %213 : vector<1x1xf32>
    %215 = arith.mulf %212, %212 : vector<1x1xf32>
    %216 = arith.subf %214, %215 : vector<1x1xf32>
    %cst_76 = arith.constant 9.99999993E-9 : f32
    %217 = vector.broadcast %cst_76 : f32 to vector<1x1xf32>
    %218 = arith.addf %216, %217 : vector<1x1xf32>
    %219 = math.rsqrt %218 : vector<1x1xf32>
    %220 = vector.broadcast %219 : vector<1x1xf32> to vector<64x1xf32>
    %221 = arith.mulf %6, %220 : vector<64x1xf32>
    %222 = vector.broadcast %212 : vector<1x1xf32> to vector<64x1xf32>
    %223 = arith.mulf %222, %221 : vector<64x1xf32>
    %224 = arith.subf %7, %223 : vector<64x1xf32>
    %225 = vector.broadcast %221 : vector<64x1xf32> to vector<64x128xf32>
    %226 = arith.mulf %201, %225 : vector<64x128xf32>
    %227 = vector.broadcast %224 : vector<64x1xf32> to vector<64x128xf32>
    %228 = arith.addf %226, %227 : vector<64x128xf32>
    %229 = arith.truncf %228 : vector<64x128xf32> to vector<64x128xbf16>
    %cst_77 = arith.constant dense<0.000000e+00> : vector<48x128xf32>
    %230 = tpu.matmul %10, %229, %cst_77 {dimension_numbers = #tpu.dot_dimension_numbers<[1], [0], [0], [1], [0, 0, 1, 1], [], []>} : vector<48x64xbf16>, vector<64x128xbf16>, vector<48x128xf32> -> vector<48x128xf32>
    %231 = vector.broadcast %11 : vector<48x1xf32> to vector<48x128xf32>
    %232 = arith.addf %230, %231 : vector<48x128xf32>
    %233 = vector.extract_strided_slice %232 {offsets = [0, 0], sizes = [16, 128], strides = [1, 1]} : vector<48x128xf32> to vector<16x128xf32>
    %c1_78 = arith.constant 1 : index
    %c0_79 = arith.constant 0 : index
    %c0_80 = arith.constant 0 : index
    %234 = vector.load %arg13[%c1_78, %c0_79, %c0_80] : memref<2x16x128xf32, #tpu.memory_space<vmem>>, vector<1x16x128xf32>
    %235 = vector.shape_cast %234 : vector<1x16x128xf32> to vector<16x128xf32>
    %236 = vector.shape_cast %233 : vector<16x128xf32> to vector<1x16x128xf32>
    tpu.vector_store %arg13[%c1_78, %c0_79, %c0_80], %236 {strides = array<i32>} : memref<2x16x128xf32, #tpu.memory_space<vmem>>, vector<1x16x128xf32>,
    %237 = vector.extract_strided_slice %232 {offsets = [16, 0], sizes = [32, 128], strides = [1, 1]} : vector<48x128xf32> to vector<32x128xf32>
    %c1_81 = arith.constant 1 : index
    %c0_82 = arith.constant 0 : index
    %c0_83 = arith.constant 0 : index
    %238 = vector.load %arg14[%c1_81, %c0_82, %c0_83] : memref<2x32x128xf32, #tpu.memory_space<vmem>>, vector<1x32x128xf32>
    %239 = vector.shape_cast %238 : vector<1x32x128xf32> to vector<32x128xf32>
    %240 = vector.shape_cast %237 : vector<32x128xf32> to vector<1x32x128xf32>
    tpu.vector_store %arg14[%c1_81, %c0_82, %c0_83], %240 {strides = array<i32>} : memref<2x32x128xf32, #tpu.memory_space<vmem>>, vector<1x32x128xf32>,
    return
  }
  func.func @transform_0(%arg0: i32) -> (i32, i32, i32) {
    %c0_i32 = arith.constant 0 : i32
    %c0_i32_0 = arith.constant 0 : i32
    %c0_i32_1 = arith.constant 0 : i32
    return %arg0, %c0_i32, %c0_i32_0 : i32, i32, i32
  }
  func.func @transform_1(%arg0: i32) -> (i32, i32) {
    %c0_i32 = arith.constant 0 : i32
    %c0_i32_0 = arith.constant 0 : i32
    %c0_i32_1 = arith.constant 0 : i32
    return %c0_i32, %c0_i32_0 : i32, i32
  }
  func.func @transform_2(%arg0: i32) -> (i32, i32) {
    %c0_i32 = arith.constant 0 : i32
    %c0_i32_0 = arith.constant 0 : i32
    %c0_i32_1 = arith.constant 0 : i32
    return %c0_i32, %c0_i32_0 : i32, i32
  }
  func.func @transform_3(%arg0: i32) -> i32 {
    %c0_i32 = arith.constant 0 : i32
    %c0_i32_0 = arith.constant 0 : i32
    return %c0_i32 : i32
  }
  func.func @transform_4(%arg0: i32) -> (i32, i32) {
    %c0_i32 = arith.constant 0 : i32
    %c0_i32_0 = arith.constant 0 : i32
    %c0_i32_1 = arith.constant 0 : i32
    return %c0_i32, %c0_i32_0 : i32, i32
  }
  func.func @transform_5(%arg0: i32) -> (i32, i32) {
    %c0_i32 = arith.constant 0 : i32
    %c0_i32_0 = arith.constant 0 : i32
    %c0_i32_1 = arith.constant 0 : i32
    return %c0_i32, %c0_i32_0 : i32, i32
  }
  func.func @transform_6(%arg0: i32) -> (i32, i32) {
    %c0_i32 = arith.constant 0 : i32
    %c0_i32_0 = arith.constant 0 : i32
    %c0_i32_1 = arith.constant 0 : i32
    return %c0_i32, %c0_i32_0 : i32, i32
  }
  func.func @transform_7(%arg0: i32) -> (i32, i32) {
    %c0_i32 = arith.constant 0 : i32
    %c0_i32_0 = arith.constant 0 : i32
    %c0_i32_1 = arith.constant 0 : i32
    return %c0_i32, %c0_i32_0 : i32, i32
  }
  func.func @transform_8(%arg0: i32) -> (i32, i32) {
    %c0_i32 = arith.constant 0 : i32
    %c0_i32_0 = arith.constant 0 : i32
    %c0_i32_1 = arith.constant 0 : i32
    return %c0_i32, %c0_i32_0 : i32, i32
  }
  func.func @transform_9(%arg0: i32) -> (i32, i32) {
    %c0_i32 = arith.constant 0 : i32
    %c0_i32_0 = arith.constant 0 : i32
    %c0_i32_1 = arith.constant 0 : i32
    return %c0_i32, %c0_i32_0 : i32, i32
  }
  func.func @transform_10(%arg0: i32) -> (i32, i32) {
    %c0_i32 = arith.constant 0 : i32
    %c0_i32_0 = arith.constant 0 : i32
    %c0_i32_1 = arith.constant 0 : i32
    return %c0_i32, %c0_i32_0 : i32, i32
  }
  func.func @transform_11(%arg0: i32) -> (i32, i32) {
    %c0_i32 = arith.constant 0 : i32
    %c0_i32_0 = arith.constant 0 : i32
    %c0_i32_1 = arith.constant 0 : i32
    return %c0_i32, %c0_i32_0 : i32, i32
  }
  func.func @transform_12(%arg0: i32) -> (i32, i32, i32) {
    %c0_i32 = arith.constant 0 : i32
    %c0_i32_0 = arith.constant 0 : i32
    %c0_i32_1 = arith.constant 0 : i32
    return %arg0, %c0_i32, %c0_i32_0 : i32, i32, i32
  }
  func.func @transform_13(%arg0: i32) -> (i32, i32, i32) {
    %c0_i32 = arith.constant 0 : i32
    %c0_i32_0 = arith.constant 0 : i32
    %c0_i32_1 = arith.constant 0 : i32
    return %arg0, %c0_i32, %c0_i32_0 : i32, i32, i32
  }
}

</mosaic_0001>

<bundles_post_ra>
// kernel: conv1d_block.1
= control target key start
LH: loop header
LB: loop body
LE: loop exit
PB: predicated region body
PF: predicated region fallthrough
CT: control target
= control target key end

     0   :  { %19 = vsyncpa [#allocation4], 0  ;;  %s2980_s0 = inlined_call_operand.vmem [shape: f32[2,16,128], index: 0, kind: input, shape index: {}]   ;;  %s2981_s1 = inlined_call_operand.vmem [shape: bf16[64,16], index: 1, kind: input, shape index: {}]   ;;  %s2982_s2 = inlined_call_operand.vmem [shape: f32[64,1], index: 2, kind: input, shape index: {}]   ;;  %s2983_s3 = inlined_call_operand.vmem [shape: f32[2], index: 3, kind: input, shape index: {}]   ;;  %s2984_s4 = inlined_call_operand.vmem [shape: f32[64,1], index: 4, kind: input, shape index: {}]   ;;  %s2985_s5 = inlined_call_operand.vmem [shape: f32[64,1], index: 5, kind: input, shape index: {}]   ;;  %s2986_s6 = inlined_call_operand.vmem [shape: f32[64,3], index: 6, kind: input, shape index: {}]   ;;  %s2987_s7 = inlined_call_operand.vmem [shape: f32[64,1], index: 7, kind: input, shape index: {}]   ;;  %s2988_s8 = inlined_call_operand.vmem [shape: f32[64,1], index: 8, kind: input, shape index: {}]   ;;  %s2989_s9 = inlined_call_operand.vmem [shape: f32[64,1], index: 9, kind: input, shape index: {}]   ;;  %s2990_s10 = inlined_call_operand.vmem [shape: bf16[48,64], index: 10, kind: input, shape index: {}]   ;;  %s2991_s11 = inlined_call_operand.vmem [shape: f32[48,1], index: 11, kind: input, shape index: {}]   ;;  %s2992_s12 = inlined_call_operand.hbm [shape: f32[2,16,128], index: 12, kind: output, shape index: {0}]   ;;  %s2993_s13 = inlined_call_operand.hbm [shape: f32[2,32,128], index: 13, kind: output, shape index: {1}]  }
   0x1   :  { %20 = vsyncpa [#allocation3], 0 }
   0x2   :  { %21 = vsyncpa [#allocation7], 0  ;;  %s34_s27 = sshll.u32 %s2983_s3, 4  ;;  %s35_s27 = int_to_ptr.vmem [resolvable:$true] %s34_s27 }
   0x3   :  { %s1942_s28 = scalar_lea.vmem %s35_s27, 16  ;;  %p1947_p1 = scmp.lt.s32.totalorder %s35_s27, %s35_s27 }
   0x4   :  { %p1943_p0 = scmp.ne.s32.totalorder %s35_s27, %s1942_s28  ;;  %p1948_p2 = scmp.lt.s32.totalorder %s1942_s28, %s1942_s28 }
   0x6   :  { %p1949_p3 = por %p1948_p2, %p1947_p1 }
   0x8   :  { %p1950_p4 = pnand %p1949_p3, %p1943_p0 }
   0xa   :  { %1953 = shalt.err (!%p1950_p4)
}
   0xb   :  { %s2000_s29 = smov [#allocation2]  }
   0xc   :  { %37 = dma.vmem_to_smem %s35_s27, 16, %s2000_s29, [#allocation4]  }
   0xd   :  { %1994 = dma.done.wait [#allocation4], 16  }
   0xe   :  { %1995 = vsyncadd [#allocation4], 4294967280 }
   0xf   :  { %57 = sfence }
  0x10   :  { %v147_v0 = vld [vmem:[%s2980_s0] sm:$0xff]  ;;  %v148_v1 = vld [vmem:[%s2980_s0 + $0x8] sm:$0xff]  ;;  %v1802_v2 = vld [vmem:[%s2980_s0 + $0x10] sm:$0xff]  ;;  %v2001_v5 = vmov 2   ;;  %vm210_vm0 = vcmask 130048   ;;  %v2002_v8 = vmov 0  }
  0x11   :  { %v149_v3 = vpack.c.bf16 %v148_v1, %v147_v0  ;;  %v1803_v4 = vld [vmem:[%s2980_s0 + $0x18] sm:$0xff]  ;;  %1911 = vset.pattern.permute.xlu0 %v2001_v5  ;;  %v1927_v7 = vld [vmem:[%s2981_s1] sm:$0xff]   ;;  %1907 = vset.pattern.permute.xlu1 %v2002_v8  ;;  %v1928_v9 = vld [vmem:[%s2981_s1 + $0x8] sm:$0xff]   ;;  %v2003_v16 = vmov 1   ;;  %s75_s18 = sld [smem:[#allocation2]]  ;;  %s2005_s21 = smov 126  }
  0x12   :  { %v1091_v6 = vpack.c.bf16 %v1803_v4, %v1802_v2  ;;  %v1929_v10 = vld [vmem:[%s2981_s1 + $0x10] sm:$0xff]   ;;  %1837 = vmatprep.mubr.msk.bf16.mxu1 %vm210_vm0, %v1927_v7  ;;  %v109_v11 = vld [vmem:[%s2986_s6] sm:$0xff]  ;;  %1867 = vmatprep.mubr.msk.bf16.mxu0 %vm210_vm0, %v1927_v7  ;;  %v110_v13 = vld [vmem:[%s2986_s6 + $0x8] sm:$0xff]  ;;  %s1787_s22 = sld [smem:[#allocation2 + $0x1]] }
  0x13   :  { %1835 = vmatprep.subr.bf16.mxu1 %v149_v3  ;;  %654 = vperm.xlu0 %1911, %v109_v11   ;;  %v69_v12 = vld [vmem:[%s2982_s2 + $0x10] sm:$0xff]  ;;  %v70_v14 = vld [vmem:[%s2982_s2 + $0x18] sm:$0xff]  ;;  %v72_v18 = vld [vmem:[%s2982_s2 + $0x28] sm:$0xff] }
  0x14   :  { %1865 = vmatprep.subr.bf16.mxu0 %v1091_v6  ;;  %1836 = vmatpush3.bf16.msra.mxu1 %v149_v3  ;;  %v1930_v15 = vld [vmem:[%s2981_s1 + $0x18] sm:$0xff]   ;;  %v67_v19 = vld [vmem:[%s2982_s2] sm:$0xff]  ;;  %v68_v21 = vld [vmem:[%s2982_s2 + $0x8] sm:$0xff]  ;;  %s2008_s1 = smov [#allocation5]  }
  0x15   :  { %1866 = vmatpush3.bf16.msra.mxu0 %v1091_v6  ;;  %162 = vperm.xlu1 %1907, %v69_v12   ;;  %v112_v17 = vld [vmem:[%s2986_s6 + $0x18] sm:$0xff]  ;;  %v71_v22 = vld [vmem:[%s2982_s2 + $0x20] sm:$0xff]  ;;  %v73_v23 = vld [vmem:[%s2982_s2 + $0x30] sm:$0xff] }
  0x16   :  { %v74_v20 = vld [vmem:[%s2982_s2 + $0x38] sm:$0xff]  ;;  %v111_v24 = vld [vmem:[%s2986_s6 + $0x10] sm:$0xff]  ;;  %v2162_v25 = vld [vmem:[%s2986_s6 + $0x20] sm:$0xff] }
  0x17   :  { %1838 = vmatmul.mubr.msk.bf16.vlgmr.msra.gmra.mxu1 %vm210_vm0, %v1928_v9  ;;  %1912 = vset.pattern.permute.xlu0 %v2003_v16  ;;  %v117_v26 = vld [vmem:[%s2987_s7] sm:$0xff]  ;;  %v118_v27 = vld [vmem:[%s2987_s7 + $0x8] sm:$0xff]  ;;  %v2186_v35 = vstv %s75_s18 }
  0x18   :  { %1868 = vmatmul.mubr.msk.bf16.vlgmr.msra.gmra.mxu0 %vm210_vm0, %v1928_v9  ;;  %1841 = vmatprep.mubr.msk.bf16.mxu1 %vm210_vm0, %v1929_v10 }
  0x19   :  { %1871 = vmatprep.mubr.msk.bf16.mxu0 %vm210_vm0, %v1929_v10  ;;  %584 = vperm.xlu0 %1912, %v110_v13  }
  0x1a   :  { %167 = vperm.xlu1 %1907, %v70_v14  }
  0x1d   :  { %592 = vperm.xlu0 %1912, %v112_v17  }
  0x1e   :  { %177 = vperm.xlu1 %1907, %v72_v18  }
  0x1f   :  { %1842 = vmatmul.mubr.msk.bf16.gmra.mxu1 %vm210_vm0, %v1930_v15 }
  0x20   :  { %1872 = vmatmul.mubr.msk.bf16.gmra.mxu0 %vm210_vm0, %v1930_v15 }
  0x21   :  { %1915 = vset.pattern.permute.xlu0 %v2002_v8 }
  0x22   :  { %152 = vperm.xlu0 %1915, %v67_v19   ;;  %187 = vperm.xlu1 %1907, %v74_v20  }
  0x26   :  { %157 = vperm.xlu0 %1915, %v68_v21   ;;  %533 = vperm.xlu1 %1907, %v109_v11  }
  0x2a   :  { %172 = vperm.xlu0 %1915, %v71_v22   ;;  %1908 = vset.pattern.permute.xlu1 %v2003_v16 }
  0x2b   :  { %580 = vperm.xlu1 %1908, %v109_v11  }
  0x2e   :  { %182 = vperm.xlu0 %1915, %v73_v23  }
  0x2f   :  { %1909 = vset.pattern.permute.xlu1 %v2002_v8 }
  0x30   :  { %543 = vperm.xlu1 %1909, %v111_v24  }
  0x32   :  { %538 = vperm.xlu0 %1915, %v110_v13  }
  0x34   :  { %1910 = vset.pattern.permute.xlu1 %v2003_v16 }
  0x35   :  { %588 = vperm.xlu1 %1910, %v111_v24  }
  0x36   :  { %553 = vperm.xlu0 %1915, %v2162_v25  }
  0x39   :  { %1913 = vset.pattern.permute.xlu1 %v2001_v5 }
  0x3a   :  { %703 = vperm.xlu0 %1915, %v117_v26   ;;  %658 = vperm.xlu1 %1913, %v110_v13  }
  0x3e   :  { %1914 = vset.pattern.permute.xlu1 %v2002_v8 }
  0x3f   :  { %548 = vperm.xlu1 %1914, %v112_v17  }
  0x43   :  { %1916 = vset.pattern.permute.xlu1 %v2001_v5 }
  0x44   :  { %662 = vperm.xlu1 %1916, %v111_v24  }
  0x48   :  { %1917 = vset.pattern.permute.xlu1 %v2003_v16 }
  0x49   :  { %596 = vperm.xlu1 %1917, %v2162_v25  }
  0x4d   :  { %1918 = vset.pattern.permute.xlu1 %v2001_v5 }
  0x4e   :  { %666 = vperm.xlu1 %1918, %v112_v17  }
  0x52   :  { %1919 = vset.pattern.permute.xlu1 %v2002_v8 }
  0x53   :  { %708 = vperm.xlu1 %1919, %v118_v27  }
  0x57   :  { %1920 = vset.pattern.permute.xlu1 %v2003_v16 }
  0x8e   :  { %v2180_v28 = vpop.permute.xlu0 %654 }
  0x8f   :  { %3002 = vst [vmem:[#allocation11_spill] sm:$0xff] %v2180_v28 }
  0x90   :  { %v163_v33 = vpop.permute.xlu1 %162 }
  0x94   :  { %v2182_v29 = vpop.permute.xlu0 %584 }
  0x95   :  { %v168_v2 = vpop.permute.xlu1 %167 }
  0x98   :  { %v2184_v30 = vpop.permute.xlu0 %592 }
  0x99   :  { %3003 = vst [vmem:[#allocation12_spill] sm:$0xff] %v2184_v30 }
  0x9d   :  { %v153_v31 = vpop.permute.xlu0 %152 }
  0xa1   :  { %v158_v32 = vpop.permute.xlu0 %157 }
  0xa5   :  { %v2189_v43 = vpop.permute.xlu0 %172 }
  0xa9   :  { %v183_v57 = vpop.permute.xlu0 %182 }
  0xd7   :  { %v1839_v34 = vpop.f32.mrf.mxu1 }
  0xd8   :  { %v266_v36 = vadd.f32 %v1839_v34, %v163_v33  ;;  %v1869_v37 = vpop.f32.mrf.mxu0 }
  0xd9   :  { %v1135_v38 = vadd.f32 %v1869_v37, %v163_v33  ;;  %v257_v39 = vpop.f32.mrf.mxu1 }
  0xda   :  { %v299_v40 = vmul.f32 %v2186_v35, %v266_v36  ;;  %v258_v41 = vadd.f32 %v257_v39, %v153_v31  ;;  %v1126_v42 = vpop.f32.mrf.mxu0  ;;  %vm290_vm1 = vcmp.ge.f32.partialorder %v266_v36, 0.0 }
  0xdb   :  { %v1840_v44 = vpop.f32.mrf.mxu1  ;;  %v1167_v45 = vmul.f32 %v1135_v38, %v2186_v35  ;;  %vm1159_vm3 = vcmp.ge.f32.partialorder %v1135_v38, 0.0  ;;  %v1127_v55 = vadd.f32 %v1126_v42, %v153_v31 }
  0xdc   :  { %vm288_vm2 = vcmp.ge.f32.partialorder %v258_v41, 0.0  ;;  %v297_v46 = vmul.f32 %v2186_v35, %v258_v41  ;;  %v1870_v47 = vpop.f32.mrf.mxu0  ;;  %v2193_v48 = vsel %vm290_vm1, %v266_v36, %v299_v40  ;;  %v269_v4 = vadd.f32 %v1840_v44, %v168_v2  ;;  %v178_v36 = vpop.permute.xlu1 %177 }
  0xdd   :  { %317 = vadd.xlane.f32.xlu0 %v2193_v48  ;;  %v260_v49 = vpop.f32.mrf.mxu1  ;;  %v344_v50 = vmul.f32 %v2193_v48, %v2193_v48  ;;  %v2200_v56 = vsel %vm1159_vm3, %v1135_v38, %v1167_v45  ;;  %v1165_v62 = vmul.f32 %v1127_v55, %v2186_v35  ;;  %vm1157_vm5 = vcmp.ge.f32.partialorder %v1127_v55, 0.0  ;;  %v114_v45 = vld [vmem:[%s2986_s6 + $0x28] sm:$0xff] }
  0xde   :  { %v261_v51 = vadd.f32 %v260_v49, %v158_v32  ;;  %v2198_v52 = vsel %vm288_vm2, %v258_v41, %v297_v46  ;;  %v1129_v53 = vpop.f32.mrf.mxu0  ;;  %v1212_v12 = vmul.f32 %v2200_v56, %v2200_v56  ;;  %v300_v13 = vmul.f32 %v2186_v35, %v269_v4 }
  0xdf   :  { %354 = vadd.xlane.f32.xlu1 %v344_v50  ;;  %v1843_v54 = vpop.f32.mrf.mxu1  ;;  %v342_v58 = vmul.f32 %v2198_v52, %v2198_v52  ;;  %v1130_v59 = vadd.f32 %v1129_v53, %v158_v32  ;;  %v2213_v6 = vsel %vm1157_vm5, %v1127_v55, %v1165_v62  ;;  %vm291_vm8 = vcmp.ge.f32.partialorder %v269_v4, 0.0 }
  0xe0   :  { %v298_v60 = vmul.f32 %v2186_v35, %v261_v51  ;;  %v282_v61 = vadd.f32 %v1843_v54, %v183_v57  ;;  %vm289_vm4 = vcmp.ge.f32.partialorder %v261_v51, 0.0  ;;  %v1873_v11 = vpop.f32.mrf.mxu0  ;;  %v1138_v18 = vadd.f32 %v1870_v47, %v168_v2  ;;  %v188_v41 = vpop.permute.xlu1 %187 }
  0xe1   :  { %1185 = vadd.xlane.f32.xlu0 %v2200_v56  ;;  %v1166_v63 = vmul.f32 %v1130_v59, %v2186_v35  ;;  %vm1158_vm6 = vcmp.ge.f32.partialorder %v1130_v59, 0.0  ;;  %v273_v3 = vpop.f32.mrf.mxu1  ;;  %v1151_v15 = vadd.f32 %v1873_v11, %v183_v57  ;;  %v2228_v19 = vsel %vm291_vm8, %v269_v4, %v300_v13  ;;  %v115_v57 = vld [vmem:[%s2986_s6 + $0x30] sm:$0xff]  ;;  %v120_v11 = vld [vmem:[%s2987_s7 + $0x18] sm:$0xff] }
  0xe2   :  { %v303_v0 = vmul.f32 %v2186_v35, %v282_v61  ;;  %v2210_v1 = vsel %vm289_vm4, %v261_v51, %v298_v60  ;;  %vm294_vm7 = vcmp.ge.f32.partialorder %v282_v61, 0.0  ;;  %v274_v7 = vadd.f32 %v273_v3, %v2189_v43  ;;  %v1142_v37 = vpop.f32.mrf.mxu0 }
  0xe3   :  { %350 = vadd.xlane.f32.xlu1 %v342_v58  ;;  %v2219_v10 = vsel %vm1158_vm6, %v1130_v59, %v1166_v63  ;;  %v1171_v20 = vmul.f32 %v1151_v15, %v2186_v35  ;;  %vm1163_vm10 = vcmp.ge.f32.partialorder %v1151_v15, 0.0  ;;  %v1210_v22 = vmul.f32 %v2213_v6, %v2213_v6  ;;  %v1844_v40 = vpop.f32.mrf.mxu1  ;;  %v116_v63 = vld [vmem:[%s2986_s6 + $0x38] sm:$0xff] }
  0xe4   :  { %v2217_v9 = vsel %vm294_vm7, %v282_v61, %v303_v0  ;;  %v1211_v14 = vmul.f32 %v2219_v10, %v2219_v10  ;;  %v301_v17 = vmul.f32 %v2186_v35, %v274_v7  ;;  %vm292_vm9 = vcmp.ge.f32.partialorder %v274_v7, 0.0  ;;  %v1874_v49 = vpop.f32.mrf.mxu0  ;;  %v2307_v4 = vpop.permute.xlu1 %533 }
  0xe5   :  { %313 = vadd.xlane.f32.xlu0 %v2198_v52  ;;  %v1168_v23 = vmul.f32 %v1138_v18, %v2186_v35  ;;  %v348_v24 = vmul.f32 %v2217_v9, %v2217_v9  ;;  %vm1160_vm11 = vcmp.ge.f32.partialorder %v1138_v18, 0.0  ;;  %v2240_v26 = vsel %vm1163_vm10, %v1151_v15, %v1171_v20  ;;  %v276_v51 = vpop.f32.mrf.mxu1  ;;  %v122_v20 = vld [vmem:[%s2987_s7 + $0x28] sm:$0xff] }
  0xe6   :  { %v2232_v21 = vsel %vm292_vm9, %v274_v7, %v301_v17  ;;  %v1216_v31 = vmul.f32 %v2240_v26, %v2240_v26  ;;  %v345_v32 = vmul.f32 %v2228_v19, %v2228_v19  ;;  %v343_v38 = vmul.f32 %v2210_v1, %v2210_v1  ;;  %v121_v17 = vld [vmem:[%s2987_s7 + $0x20] sm:$0xff] }
  0xe7   :  { %315 = vadd.xlane.f32.xlu1 %v2210_v1  ;;  %v2242_v27 = vsel %vm1160_vm11, %v1138_v18, %v1168_v23  ;;  %v346_v33 = vmul.f32 %v2232_v21, %v2232_v21  ;;  %v1143_v39 = vadd.f32 %v1142_v37, %v2189_v43  ;;  %v285_v44 = vadd.f32 %v1844_v40, %v188_v41 }
  0xe8   :  { %v1213_v34 = vmul.f32 %v2242_v27, %v2242_v27  ;;  %v1154_v43 = vadd.f32 %v1874_v49, %v188_v41  ;;  %v277_v55 = vadd.f32 %v276_v51, %v178_v36  ;;  %v2309_v7 = vpop.permute.xlu1 %580 }
  0xe9   :  { %1181 = vadd.xlane.f32.xlu0 %v2213_v6  ;;  %v1169_v42 = vmul.f32 %v1143_v39, %v2186_v35  ;;  %vm1161_vm12 = vcmp.ge.f32.partialorder %v1143_v39, 0.0  ;;  %v304_v46 = vmul.f32 %v2186_v35, %v285_v44  ;;  %vm295_vm13 = vcmp.ge.f32.partialorder %v285_v44, 0.0 }
  0xea   :  { %v1172_v54 = vmul.f32 %v1154_v43, %v2186_v35  ;;  %vm1164_vm14 = vcmp.ge.f32.partialorder %v1154_v43, 0.0  ;;  %v302_v58 = vmul.f32 %v2186_v35, %v277_v55  ;;  %vm293_vm15 = vcmp.ge.f32.partialorder %v277_v55, 0.0 }
  0xeb   :  { %325 = vadd.xlane.f32.xlu1 %v2217_v9  ;;  %v2263_v47 = vsel %vm1161_vm12, %v1143_v39, %v1169_v42  ;;  %v2266_v50 = vsel %vm295_vm13, %v285_v44, %v304_v46 }
  0xec   :  { %v1214_v53 = vmul.f32 %v2263_v47, %v2263_v47  ;;  %v2279_v59 = vsel %vm1164_vm14, %v1154_v43, %v1172_v54  ;;  %v2283_v61 = vsel %vm293_vm15, %v277_v55, %v302_v58  ;;  %v349_v62 = vmul.f32 %v2266_v50, %v2266_v50  ;;  %v2319_v13 = vpop.permute.xlu1 %543 }
  0xed   :  { %1222 = vadd.xlane.f32.xlu0 %v1212_v12  ;;  %v1217_v3 = vmul.f32 %v2279_v59, %v2279_v59  ;;  %v123_v12 = vld [vmem:[%s2987_s7 + $0x30] sm:$0xff] }
  0xef   :  { %1220 = vadd.xlane.f32.xlu1 %v1211_v14  ;;  %v124_v14 = vld [vmem:[%s2987_s7 + $0x38] sm:$0xff] }
  0xf0   :  { %v2329_v18 = vpop.permute.xlu1 %588 }
  0xf1   :  { %319 = vadd.xlane.f32.xlu0 %v2228_v19 }
  0xf3   :  { %321 = vadd.xlane.f32.xlu1 %v2232_v21 }
  0xf4   :  { %v2336_v23 = vpop.permute.xlu1 %658 }
  0xf5   :  { %1218 = vadd.xlane.f32.xlu0 %v1210_v22 }
  0xf7   :  { %362 = vadd.xlane.f32.xlu1 %v348_v24 }
  0xf9   :  { %1187 = vadd.xlane.f32.xlu0 %v2242_v27 }
  0xfb   :  { %1230 = vadd.xlane.f32.xlu1 %v1216_v31  ;;  %v2338_v31 = vpop.permute.xlu1 %548 }
  0xfc   :  { %3006 = vst [vmem:[#allocation15_spill] sm:$0xff] %v2338_v31 }
  0xfd   :  { %356 = vadd.xlane.f32.xlu0 %v345_v32 }
  0xff   :  { %358 = vadd.xlane.f32.xlu1 %v346_v33 }
 0x101   :  { %1183 = vadd.xlane.f32.xlu0 %v2219_v10 }
 0x105   :  { %1224 = vadd.xlane.f32.xlu0 %v1213_v34  ;;  %v2340_v34 = vpop.permute.xlu1 %662 }
 0x106   :  { %3007 = vst [vmem:[#allocation16_spill] sm:$0xff] %v2340_v34 }
 0x109   :  { %352 = vadd.xlane.f32.xlu0 %v343_v38  ;;  %v2342_v37 = vpop.permute.xlu1 %596 }
 0x10a   :  { %3008 = vst [vmem:[#allocation17_spill] sm:$0xff] %v2342_v37 }
 0x10d   :  { %1193 = vadd.xlane.f32.xlu0 %v2240_v26  ;;  %v2344_v40 = vpop.permute.xlu1 %666 }
 0x10e   :  { %3009 = vst [vmem:[#allocation18_spill] sm:$0xff] %v2344_v40 }
 0x110   :  { %600 = vperm.xlu1 %1920, %v114_v45  }
 0x111   :  { %1189 = vadd.xlane.f32.xlu0 %v2263_v47  ;;  %v2346_v42 = vpop.permute.xlu1 %708 }
 0x114   :  { %1921 = vset.pattern.permute.xlu1 %v2001_v5 }
 0x115   :  { %327 = vadd.xlane.f32.xlu0 %v2266_v50  ;;  %670 = vperm.xlu1 %1921, %v2162_v25   ;;  %v1145_v25 = vpop.f32.mrf.mxu0 }
 0x116   :  { %v1146_v60 = vadd.f32 %v1145_v25, %v178_v36 }
 0x118   :  { %v1170_v0 = vmul.f32 %v1146_v60, %v2186_v35  ;;  %vm1162_vm0 = vcmp.ge.f32.partialorder %v1146_v60, 0.0 }
 0x119   :  { %1226 = vadd.xlane.f32.xlu0 %v1214_v53  ;;  %1922 = vset.pattern.permute.xlu1 %v2003_v16 }
 0x11a   :  { %604 = vperm.xlu1 %1922, %v115_v57   ;;  %v2293_v2 = vsel %vm1162_vm0, %v1146_v60, %v1170_v0 }
 0x11b   :  { %v1215_v35 = vmul.f32 %v2293_v2, %v2293_v2 }
 0x11d   :  { %1195 = vadd.xlane.f32.xlu0 %v2279_v59 }
 0x11e   :  { %1923 = vset.pattern.permute.xlu1 %v2001_v5 }
 0x11f   :  { %674 = vperm.xlu1 %1923, %v114_v45  }
 0x121   :  { %323 = vadd.xlane.f32.xlu0 %v2283_v61 }
 0x123   :  { %1924 = vset.pattern.permute.xlu1 %v2003_v16  ;;  %v347_v16 = vmul.f32 %v2283_v61, %v2283_v61 }
 0x124   :  { %608 = vperm.xlu1 %1924, %v116_v63  }
 0x125   :  { %364 = vadd.xlane.f32.xlu0 %v349_v62 }
 0x128   :  { %1925 = vset.pattern.permute.xlu1 %v2001_v5  ;;  %v119_v5 = vld [vmem:[%s2987_s7 + $0x10] sm:$0xff] }
 0x129   :  { %1191 = vadd.xlane.f32.xlu0 %v2293_v2  ;;  %678 = vperm.xlu1 %1925, %v115_v57  }
 0x12d   :  { %1232 = vadd.xlane.f32.xlu0 %v1217_v3  ;;  %682 = vperm.xlu1 %1925, %v116_v63  }
 0x131   :  { %360 = vadd.xlane.f32.xlu0 %v347_v16  ;;  %1926 = vset.pattern.permute.xlu1 %v2002_v8  ;;  %v2314_v8 = vpop.permute.xlu0 %538 }
 0x132   :  { %733 = vperm.xlu1 %1926, %v123_v12  }
 0x135   :  { %1228 = vadd.xlane.f32.xlu0 %v1215_v35  ;;  %v2324_v15 = vpop.permute.xlu0 %553 }
 0x136   :  { %3004 = vst [vmem:[#allocation13_spill] sm:$0xff] %v2324_v15  ;;  %738 = vperm.xlu1 %1926, %v124_v14  }
 0x139   :  { %v2334_v22 = vpop.permute.xlu0 %703 }
 0x13a   :  { %3005 = vst [vmem:[#allocation14_spill] sm:$0xff] %v2334_v22 }
 0x14b   :  { %558 = vperm.xlu0 %1915, %v114_v45  }
 0x14f   :  { %713 = vperm.xlu0 %1915, %v119_v5  }
 0x153   :  { %563 = vperm.xlu0 %1915, %v115_v57  }
 0x157   :  { %718 = vperm.xlu0 %1915, %v120_v11  }
 0x15b   :  { %568 = vperm.xlu0 %1915, %v116_v63  }
 0x15f   :  { %723 = vperm.xlu0 %1915, %v121_v17  }
 0x163   :  { %728 = vperm.xlu0 %1915, %v122_v20  }
 0x166   :  { %v318_v24 = vpop.xlane.xlu0 %317 }
 0x168   :  { %v355_v46 = vpop.xlane.xlu1 %354 }
 0x16a   :  { %v1186_v32 = vpop.xlane.xlu0 %1185 }
 0x16c   :  { %v351_v43 = vpop.xlane.xlu1 %350 }
 0x16e   :  { %v314_v33 = vpop.xlane.xlu0 %313 }
 0x170   :  { %v316_v54 = vpop.xlane.xlu1 %315 }
 0x171   :  { %v329_v60 = vadd.f32 %v316_v54, %v314_v33 }
 0x172   :  { %v1182_v36 = vpop.xlane.xlu0 %1181 }
 0x173   :  { %v330_v0 = vadd.f32 %v329_v60, %v318_v24 }
 0x174   :  { %v326_v57 = vpop.xlane.xlu1 %325 }
 0x176   :  { %v1223_v38 = vpop.xlane.xlu0 %1222 }
 0x178   :  { %v1221_v62 = vpop.xlane.xlu1 %1220 }
 0x17a   :  { %v320_v39 = vpop.xlane.xlu0 %319 }
 0x17b   :  { %v331_v3 = vadd.f32 %v330_v0, %v320_v39 }
 0x17c   :  { %v322_v16 = vpop.xlane.xlu1 %321 }
 0x17d   :  { %v332_v11 = vadd.f32 %v331_v3, %v322_v16 }
 0x17e   :  { %v1219_v41 = vpop.xlane.xlu0 %1218 }
 0x17f   :  { %v1234_v39 = vadd.f32 %v1221_v62, %v1219_v41 }
 0x180   :  { %v363_v20 = vpop.xlane.xlu1 %362 }
 0x181   :  { %v1235_v16 = vadd.f32 %v1234_v39, %v1223_v38 }
 0x182   :  { %v1188_v44 = vpop.xlane.xlu0 %1187 }
 0x184   :  { %v1231_v54 = vpop.xlane.xlu1 %1230 }
 0x186   :  { %v357_v45 = vpop.xlane.xlu0 %356 }
 0x18a   :  { %v1184_v49 = vpop.xlane.xlu0 %1183 }
 0x18b   :  { %v1197_v5 = vadd.f32 %v1184_v49, %v1182_v36 }
 0x18d   :  { %v1198_v14 = vadd.f32 %v1197_v5, %v1186_v32  ;;  %v359_v32 = vpop.xlane.xlu1 %358 }
 0x18e   :  { %v1225_v51 = vpop.xlane.xlu0 %1224 }
 0x18f   :  { %v1199_v31 = vadd.f32 %v1198_v14, %v1188_v44  ;;  %v1236_v44 = vadd.f32 %v1235_v16, %v1225_v51 }
 0x192   :  { %v353_v53 = vpop.xlane.xlu0 %352 }
 0x193   :  { %v366_v15 = vadd.f32 %v353_v53, %v351_v43 }
 0x195   :  { %v367_v22 = vadd.f32 %v366_v15, %v355_v46 }
 0x196   :  { %v1194_v55 = vpop.xlane.xlu0 %1193 }
 0x197   :  { %v368_v36 = vadd.f32 %v367_v22, %v357_v45 }
 0x199   :  { %v369_v53 = vadd.f32 %v368_v36, %v359_v32 }
 0x19a   :  { %v1190_v58 = vpop.xlane.xlu0 %1189 }
 0x19b   :  { %v1200_v28 = vadd.f32 %v1199_v31, %v1190_v58 }
 0x19e   :  { %v328_v25 = vpop.xlane.xlu0 %327 }
 0x1a2   :  { %v1227_v63 = vpop.xlane.xlu0 %1226 }
 0x1a3   :  { %v1237_v31 = vadd.f32 %v1236_v44, %v1227_v63  ;;  %v77_v44 = vld [vmem:[%s2984_s4] sm:$0xff] }
 0x1a6   :  { %v1196_v35 = vpop.xlane.xlu0 %1195 }
 0x1aa   :  { %v324_v12 = vpop.xlane.xlu0 %323 }
 0x1ab   :  { %v333_v17 = vadd.f32 %v332_v11, %v324_v12 }
 0x1ad   :  { %v334_v37 = vadd.f32 %v333_v17, %v326_v57 }
 0x1ae   :  { %v365_v40 = vpop.xlane.xlu0 %364 }
 0x1af   :  { %v335_v30 = vadd.f32 %v334_v37, %v328_v25 }
 0x1b1   :  { %v336_v33 = vrot.slane %v335_v30, 4 }
 0x1b2   :  { %v1192_v34 = vpop.xlane.xlu0 %1191 }
 0x1b3   :  { %v1201_v24 = vadd.f32 %v1200_v28, %v1192_v34  ;;  %v337_v60 = vadd.f32 %v336_v33, %v335_v30 }
 0x1b5   :  { %v1202_v0 = vadd.f32 %v1201_v24, %v1194_v55  ;;  %v338_v5 = vrot.slane %v337_v60, 2 }
 0x1b6   :  { %v1233_v49 = vpop.xlane.xlu0 %1232 }
 0x1b7   :  { %v1203_v3 = vadd.f32 %v1202_v0, %v1196_v35  ;;  %v339_v46 = vadd.f32 %v338_v5, %v337_v60 }
 0x1b9   :  { %v1204_v43 = vrot.slane %v1203_v3, 4  ;;  %v340_v41 = vrot.slane %v339_v46, 1 }
 0x1ba   :  { %v361_v57 = vpop.xlane.xlu0 %360 }
 0x1bb   :  { %v1205_v37 = vadd.f32 %v1204_v43, %v1203_v3  ;;  %v370_v15 = vadd.f32 %v369_v53, %v361_v57  ;;  %v341_v35 = vadd.f32 %v340_v41, %v339_v46  ;;  %v79_v57 = vld [vmem:[%s2984_s4 + $0x10] sm:$0xff]  ;;  %v82_v46 = vld [vmem:[%s2984_s4 + $0x28] sm:$0xff] }
 0x1bd   :  { %v371_v58 = vadd.f32 %v370_v15, %v363_v20  ;;  %v1206_v28 = vrot.slane %v1205_v37, 2  ;;  %v2348_v33 = vmul.f32 0.00012207031, %v341_v35  ;;  %v83_v35 = vld [vmem:[%s2984_s4 + $0x30] sm:$0xff] }
 0x1be   :  { %v1229_v25 = vpop.xlane.xlu0 %1228 }
 0x1bf   :  { %v372_v34 = vadd.f32 %v371_v58, %v365_v40  ;;  %v1238_v30 = vadd.f32 %v1237_v31, %v1229_v25  ;;  %v1207_v55 = vadd.f32 %v1206_v28, %v1205_v37  ;;  %v78_v58 = vld [vmem:[%s2984_s4 + $0x8] sm:$0xff] }
 0x1c1   :  { %v373_v22 = vrot.slane %v372_v34, 4  ;;  %v1239_v45 = vadd.f32 %v1238_v30, %v1231_v54  ;;  %v1208_v14 = vrot.slane %v1207_v55, 1  ;;  %v381_v54 = vmul.f32 %v2348_v33, %v2348_v33  ;;  %v80_v30 = vld [vmem:[%s2984_s4 + $0x18] sm:$0xff] }
 0x1c3   :  { %v374_v62 = vadd.f32 %v373_v22, %v372_v34  ;;  %v1240_v38 = vadd.f32 %v1239_v45, %v1233_v49  ;;  %v1209_v24 = vadd.f32 %v1208_v14, %v1207_v55  ;;  %v84_v34 = vld [vmem:[%s2984_s4 + $0x38] sm:$0xff]  ;;  %v81_v55 = vld [vmem:[%s2984_s4 + $0x20] sm:$0xff] }
 0x1c5   :  { %v375_v11 = vrot.slane %v374_v62, 2  ;;  %v1241_v12 = vrot.slane %v1240_v38, 4  ;;  %v2352_v36 = vmul.f32 0.00012207031, %v1209_v24  ;;  %v86_v24 = vld [vmem:[%s2985_s5 + $0x8] sm:$0xff] }
 0x1c7   :  { %v376_v51 = vadd.f32 %v375_v11, %v374_v62  ;;  %v1242_v17 = vadd.f32 %v1241_v12, %v1240_v38  ;;  %v1249_v5 = vmul.f32 %v2352_v36, %v2352_v36 }
 0x1c9   :  { %v377_v63 = vrot.slane %v376_v51, 1  ;;  %v1243_v20 = vrot.slane %v1242_v17, 2 }
 0x1cb   :  { %v378_v39 = vadd.f32 %v377_v63, %v376_v51  ;;  %v1244_v40 = vadd.f32 %v1243_v20, %v1242_v17 }
 0x1cd   :  { %v380_v60 = vmul.f32 0.00012207031, %v378_v39  ;;  %v1245_v0 = vrot.slane %v1244_v40, 1 }
 0x1cf   :  { %v382_v49 = vsub.f32 %v380_v60, %v381_v54  ;;  %v1246_v3 = vadd.f32 %v1245_v0, %v1244_v40 }
 0x1d1   :  { %v383_v32 = vadd.f32 1e-08, %v382_v49  ;;  %v1248_v16 = vmul.f32 0.00012207031, %v1246_v3 }
 0x1d3   :  { %1934 = vrsqrt.f32 %v383_v32  ;;  %v1250_v43 = vsub.f32 %v1248_v16, %v1249_v5  ;;  %v85_v32 = vld [vmem:[%s2985_s5] sm:$0xff]  ;;  %v87_v16 = vld [vmem:[%s2985_s5 + $0x10] sm:$0xff] }
 0x1d5   :  { %v1251_v53 = vadd.f32 1e-08, %v1250_v43 }
 0x1d7   :  { %1936 = vrsqrt.f32 %v1251_v53 }
 0x1e0   :  { %v1935_v37 = vpop.eup %1934 }
 0x1e1   :  { %v387_v15 = vmul.f32 %v1935_v37, %v79_v57  ;;  %v385_v31 = vmul.f32 %v1935_v37, %v77_v44  ;;  %v2368_v25 = vmul.f32 %v1935_v37, %v82_v46  ;;  %v386_v28 = vmul.f32 %v1935_v37, %v78_v58 }
 0x1e2   :  { %v2377_v41 = vmul.f32 %v1935_v37, %v84_v34  ;;  %v388_v22 = vmul.f32 %v1935_v37, %v80_v30  ;;  %v389_v38 = vmul.f32 %v1935_v37, %v81_v55  ;;  %v391_v12 = vmul.f32 %v1935_v37, %v83_v35 }
 0x1e3   :  { %421 = vperm.xlu0 %1915, %v387_v15   ;;  %411 = vperm.xlu1 %1926, %v385_v31   ;;  %v394_v20 = vmul.f32 %v386_v28, %v2348_v33  ;;  %v393_v3 = vmul.f32 %v385_v31, %v2348_v33 }
 0x1e4   :  { %v1937_v45 = vpop.eup %1936  ;;  %v397_v5 = vmul.f32 %v389_v38, %v2348_v33 }
 0x1e5   :  { %v1253_v62 = vmul.f32 %v1937_v45, %v77_v44  ;;  %v1255_v11 = vmul.f32 %v1937_v45, %v79_v57  ;;  %v1257_v14 = vmul.f32 %v1937_v45, %v81_v55  ;;  %v1254_v51 = vmul.f32 %v1937_v45, %v78_v58  ;;  %v89_v44 = vld [vmem:[%s2985_s5 + $0x20] sm:$0xff]  ;;  %v88_v55 = vld [vmem:[%s2985_s5 + $0x18] sm:$0xff] }
 0x1e6   :  { %v1259_v17 = vmul.f32 %v1937_v45, %v83_v35  ;;  %v1256_v63 = vmul.f32 %v1937_v45, %v80_v30  ;;  %v402_v39 = vsub.f32 %v86_v24, %v394_v20  ;;  %v1258_v40 = vmul.f32 %v1937_v45, %v82_v46  ;;  %v90_v20 = vld [vmem:[%s2985_s5 + $0x28] sm:$0xff] }
 0x1e7   :  { %436 = vperm.xlu0 %1915, %v2368_v25   ;;  %416 = vperm.xlu1 %1926, %v386_v28   ;;  %v1262_v60 = vmul.f32 %v1254_v51, %v2352_v36  ;;  %v1263_v54 = vmul.f32 %v1255_v11, %v2352_v36  ;;  %v1260_v49 = vmul.f32 %v1937_v45, %v84_v34  ;;  %v91_v45 = vld [vmem:[%s2985_s5 + $0x30] sm:$0xff] }
 0x1e8   :  { %v401_v53 = vsub.f32 %v85_v32, %v393_v3  ;;  %v395_v57 = vmul.f32 %v387_v15, %v2348_v33  ;;  %v1265_v37 = vmul.f32 %v1257_v14, %v2352_v36  ;;  %v405_v31 = vsub.f32 %v89_v44, %v397_v5  ;;  %v2432_v3 = vpop.permute.xlu0 %558 }
 0x1e9   :  { %v1270_v0 = vsub.f32 %v86_v24, %v1262_v60  ;;  %v1271_v43 = vsub.f32 %v87_v16, %v1263_v54  ;;  %v1261_v58 = vmul.f32 %v1253_v62, %v2352_v36  ;;  %v399_v28 = vmul.f32 %v391_v12, %v2348_v33 }
 0x1ea   :  { %v403_v46 = vsub.f32 %v87_v16, %v395_v57  ;;  %v1273_v34 = vsub.f32 %v89_v44, %v1265_v37  ;;  %v396_v15 = vmul.f32 %v388_v22, %v2348_v33 }
 0x1eb   :  { %446 = vperm.xlu0 %1915, %v2377_v41   ;;  %426 = vperm.xlu1 %1926, %v388_v22   ;;  %v1269_v30 = vsub.f32 %v85_v32, %v1261_v58  ;;  %v1268_v22 = vmul.f32 %v1260_v49, %v2352_v36 }
 0x1ec   :  { %v404_v35 = vsub.f32 %v88_v55, %v396_v15  ;;  %v2436_v16 = vpop.permute.xlu0 %713 }
 0x1ef   :  { %1279 = vperm.xlu0 %1915, %v1253_v62   ;;  %431 = vperm.xlu1 %1926, %v389_v38   ;;  %v1267_v62 = vmul.f32 %v1259_v17, %v2352_v36  ;;  %v407_v38 = vsub.f32 %v91_v45, %v399_v28 }
 0x1f3   :  { %1289 = vperm.xlu0 %1915, %v1255_v11   ;;  %441 = vperm.xlu1 %1926, %v391_v12   ;;  %v1264_v11 = vmul.f32 %v1256_v63, %v2352_v36  ;;  %v1275_v12 = vsub.f32 %v91_v45, %v1267_v62 }
 0x1f7   :  { %1299 = vperm.xlu0 %1915, %v1257_v14   ;;  %1284 = vperm.xlu1 %1926, %v1254_v51   ;;  %v1272_v14 = vsub.f32 %v88_v55, %v1264_v11  ;;  %v398_v51 = vmul.f32 %v2368_v25, %v2348_v33  ;;  %v400_v25 = vmul.f32 %v2377_v41, %v2348_v33 }
 0x1f9   :  { %v406_v24 = vsub.f32 %v90_v20, %v398_v51 }
 0x1fb   :  { %1309 = vperm.xlu0 %1915, %v1259_v17   ;;  %1294 = vperm.xlu1 %1926, %v1256_v63   ;;  %v92_v17 = vld [vmem:[%s2985_s5 + $0x38] sm:$0xff]  ;;  %s2004_s5 = smov 2  }
 0x1fc   :  { %v1276_v63 = vsub.f32 %v92_v17, %v1268_v22  ;;  %v408_v54 = vsub.f32 %v92_v17, %v400_v25 }
 0x1ff   :  { %464 = vperm.xlu0 %1915, %v402_v39   ;;  %1304 = vperm.xlu1 %1926, %v1258_v40   ;;  %v1266_v39 = vmul.f32 %v1258_v40, %v2352_v36  ;;  %v2440_v40 = vpop.permute.xlu0 %563 }
 0x201   :  { %v1274_v60 = vsub.f32 %v90_v20, %v1266_v39 }
 0x203   :  { %1332 = vperm.xlu0 %1915, %v1270_v0   ;;  %1314 = vperm.xlu1 %1926, %v1260_v49   ;;  %v2428_v0 = vpop.permute.xlu1 %600  ;;  %v2444_v33 = vpop.permute.xlu0 %718 }
 0x207   :  { %1337 = vperm.xlu0 %1915, %v1271_v43   ;;  %459 = vperm.xlu1 %1926, %v401_v53   ;;  %v2430_v49 = vpop.permute.xlu1 %670  ;;  %v2448_v43 = vpop.permute.xlu0 %568 }
 0x20b   :  { %479 = vperm.xlu0 %1915, %v405_v31   ;;  %469 = vperm.xlu1 %1926, %v403_v46   ;;  %v2434_v32 = vpop.permute.xlu1 %604  ;;  %v2452_v57 = vpop.permute.xlu0 %723 }
 0x20f   :  { %1347 = vperm.xlu0 %1915, %v1273_v34   ;;  %1327 = vperm.xlu1 %1926, %v1269_v30   ;;  %v2438_v36 = vpop.permute.xlu1 %674  ;;  %v2456_v37 = vpop.permute.xlu0 %728 }
 0x213   :  { %489 = vperm.xlu0 %1915, %v407_v38   ;;  %474 = vperm.xlu1 %1926, %v404_v35   ;;  %v2442_v5 = vpop.permute.xlu1 %608 }
 0x217   :  { %1357 = vperm.xlu0 %1915, %v1275_v12   ;;  %1342 = vperm.xlu1 %1926, %v1272_v14   ;;  %v2446_v41 = vpop.permute.xlu1 %678 }
 0x21b   :  { %1362 = vperm.xlu0 %1915, %v1276_v63   ;;  %484 = vperm.xlu1 %1926, %v406_v24   ;;  %v2450_v53 = vpop.permute.xlu1 %682 }
 0x21f   :  { %1352 = vperm.xlu1 %1926, %v1274_v60   ;;  %v2454_v44 = vpop.permute.xlu1 %733 }
 0x223   :  { %494 = vperm.xlu1 %1926, %v408_v54   ;;  %v2458_v31 = vpop.permute.xlu1 %738 }
 0x25e   :  { %v422_v46 = vpop.permute.xlu0 %421  ;;  %v412_v58 = vpop.permute.xlu1 %411 }
 0x25f   :  { %v449_v25 = vmul.f32 %v412_v58, %v2198_v52 }
 0x262   :  { %v2460_v28 = vpop.permute.xlu0 %436  ;;  %v417_v34 = vpop.permute.xlu1 %416 }
 0x263   :  { %v450_v14 = vmul.f32 %v417_v34, %v2210_v1 }
 0x266   :  { %v2462_v30 = vpop.permute.xlu0 %446  ;;  %v427_v15 = vpop.permute.xlu1 %426 }
 0x26a   :  { %v1280_v45 = vpop.permute.xlu0 %1279  ;;  %v432_v55 = vpop.permute.xlu1 %431 }
 0x26b   :  { %v1317_v52 = vmul.f32 %v1280_v45, %v2213_v6  ;;  %v452_v45 = vmul.f32 %v427_v15, %v2228_v19  ;;  %v453_v19 = vmul.f32 %v432_v55, %v2232_v21  ;;  %v454_v55 = vmul.f32 %v2460_v28, %v2283_v61 }
 0x26e   :  { %v1290_v62 = vpop.permute.xlu0 %1289  ;;  %v2464_v38 = vpop.permute.xlu1 %441 }
 0x26f   :  { %v455_v61 = vmul.f32 %v2464_v38, %v2217_v9  ;;  %v456_v38 = vmul.f32 %v2462_v30, %v2266_v50 }
 0x272   :  { %v1300_v35 = vpop.permute.xlu0 %1299  ;;  %v1285_v11 = vpop.permute.xlu1 %1284 }
 0x273   :  { %v1318_v63 = vmul.f32 %v1285_v11, %v2219_v10 }
 0x276   :  { %v2466_v22 = vpop.permute.xlu0 %1309  ;;  %v1295_v12 = vpop.permute.xlu1 %1294 }
 0x27a   :  { %v465_v51 = vpop.permute.xlu0 %464  ;;  %v1305_v20 = vpop.permute.xlu1 %1304 }
 0x27b   :  { %v2469_v17 = vadd.f32 %v465_v51, %v450_v14  ;;  %v1319_v14 = vmul.f32 %v1290_v62, %v2200_v56  ;;  %v451_v56 = vmul.f32 %v422_v46, %v2193_v48 }
 0x27d   :  { %507 = vrot.lane.b32.xlu0 %v2469_v17, %s2004_s5 }
 0x27e   :  { %v1333_v24 = vpop.permute.xlu0 %1332  ;;  %v1315_v39 = vpop.permute.xlu1 %1314 }
 0x27f   :  { %v2474_v60 = vadd.f32 %v1333_v24, %v1318_v63  ;;  %v1320_v24 = vmul.f32 %v1295_v12, %v2242_v27  ;;  %v1321_v27 = vmul.f32 %v1300_v35, %v2263_v47 }
 0x281   :  { %1375 = vrot.lane.b32.xlu0 %v2474_v60, %s2004_s5 }
 0x282   :  { %v460_v1 = vpop.permute.xlu1 %459  ;;  %v1338_v34 = vpop.permute.xlu0 %1337 }
 0x283   :  { %v2479_v54 = vadd.f32 %v460_v1, %v449_v25  ;;  %v2486_v11 = vadd.f32 %v1338_v34, %v1319_v14  ;;  %v1322_v14 = vmul.f32 %v1305_v20, %v2293_v2  ;;  %v1324_v20 = vmul.f32 %v1315_v39, %v2279_v59 }
 0x285   :  { %629 = vrot.lane.b32.xlu0 %v2469_v17, %s2005_s21  ;;  %505 = vrot.lane.b32.xlu1 %v2479_v54, %s2004_s5 }
 0x286   :  { %v470_v10 = vpop.permute.xlu1 %469  ;;  %v480_v46 = vpop.permute.xlu0 %479 }
 0x287   :  { %v2498_v62 = vadd.f32 %v470_v10, %v451_v56  ;;  %v2523_v1 = vadd.f32 %v480_v46, %v453_v19  ;;  %v1323_v56 = vmul.f32 %v2466_v22, %v2240_v26  ;;  %v137_v26 = vlaneseq }
 0x289   :  { %1377 = vrot.lane.b32.xlu0 %v2486_v11, %s2004_s5  ;;  %v138_v50 = vand.u32 127, %v137_v26 }
 0x28a   :  { %v1328_v58 = vpop.permute.xlu1 %1327  ;;  %v1348_v15 = vpop.permute.xlu0 %1347 }
 0x28b   :  { %v2491_v51 = vadd.f32 %v1328_v58, %v1317_v52  ;;  %v2530_v34 = vadd.f32 %v1348_v15, %v1321_v27  ;;  %v2584_v30 = vadd.s32 4294967294, %v138_v50 }
 0x28d   :  { %1423 = vrot.lane.b32.xlu0 %v2474_v60, %s2005_s21  ;;  %1373 = vrot.lane.b32.xlu1 %v2491_v51, %s2004_s5  ;;  %vm140_vm1 = vcmp.ge.s32.totalorder %v2584_v30, 0 }
 0x28e   :  { %v475_v6 = vpop.permute.xlu1 %474  ;;  %v490_v21 = vpop.permute.xlu0 %489 }
 0x28f   :  { %v2509_v48 = vadd.f32 %v475_v6, %v452_v45  ;;  %v2553_v28 = vadd.f32 %v490_v21, %v455_v61  ;;  %v2587_v6 = vadd.s32 2, %v138_v50  ;;  %v1406_v50 = vmul.f32 %v2474_v60, %v2182_v29 }
 0x291   :  { %631 = vrot.lane.b32.xlu0 %v2498_v62, %s2005_s21  ;;  %509 = vrot.lane.b32.xlu1 %v2498_v62, %s2004_s5  ;;  %vm145_vm2 = vcmp.lt.s32.totalorder %v2587_v6, 128 }
 0x292   :  { %v1343_v63 = vpop.permute.xlu1 %1342  ;;  %v1358_v10 = vpop.permute.xlu0 %1357 }
 0x293   :  { %v2516_v25 = vadd.f32 %v1343_v63, %v1320_v24  ;;  %v2570_v59 = vadd.f32 %v1358_v10, %v1323_v56  ;;  %v612_v24 = vmul.f32 %v2182_v29, %v2469_v17  ;;  %v613_v29 = vmul.f32 %v2329_v18, %v2498_v62 }
 0x295   :  { %1425 = vrot.lane.b32.xlu0 %v2486_v11, %s2005_s21  ;;  %627 = vrot.lane.b32.xlu1 %v2479_v54, %s2005_s21 }
 0x296   :  { %v485_v12 = vpop.permute.xlu1 %484  ;;  %v1363_v2 = vpop.permute.xlu0 %1362 }
 0x297   :  { %v2538_v47 = vadd.f32 %v485_v12, %v454_v55  ;;  %v2560_v58 = vadd.f32 %v1363_v2, %v1324_v20 }
 0x299   :  { %1421 = vrot.lane.b32.xlu1 %v2491_v51, %s2005_s21  ;;  %633 = vrot.lane.b32.xlu0 %v2509_v48, %s2005_s21 }
 0x29a   :  { %v1353_v35 = vpop.permute.xlu1 %1352 }
 0x29b   :  { %v2545_v52 = vadd.f32 %v1353_v35, %v1322_v14  ;;  %v2598_v14 = vstv %s1787_s22 }
 0x29d   :  { %511 = vrot.lane.b32.xlu1 %v2509_v48, %s2004_s5  ;;  %1427 = vrot.lane.b32.xlu0 %v2516_v25, %s2005_s21 }
 0x29e   :  { %v495_v9 = vpop.permute.xlu1 %494 }
 0x29f   :  { %v2572_v39 = vadd.f32 %v495_v9, %v456_v38 }
 0x2a1   :  { %635 = vrot.lane.b32.xlu0 %v2523_v1, %s2005_s21  ;;  %1379 = vrot.lane.b32.xlu1 %v2516_v25, %s2004_s5 }
 0x2a5   :  { %1429 = vrot.lane.b32.xlu0 %v2530_v34, %s2005_s21  ;;  %513 = vrot.lane.b32.xlu1 %v2523_v1, %s2004_s5 }
 0x2a9   :  { %1381 = vrot.lane.b32.xlu1 %v2530_v34, %s2004_s5  ;;  %637 = vrot.lane.b32.xlu0 %v2538_v47, %s2005_s21 }
 0x2ad   :  { %515 = vrot.lane.b32.xlu1 %v2538_v47, %s2004_s5  ;;  %1431 = vrot.lane.b32.xlu0 %v2545_v52, %s2005_s21 }
 0x2b1   :  { %639 = vrot.lane.b32.xlu0 %v2553_v28, %s2005_s21  ;;  %1383 = vrot.lane.b32.xlu1 %v2545_v52, %s2004_s5 }
 0x2b5   :  { %1387 = vrot.lane.b32.xlu0 %v2560_v58, %s2004_s5  ;;  %517 = vrot.lane.b32.xlu1 %v2553_v28, %s2004_s5 }
 0x2b9   :  { %1385 = vrot.lane.b32.xlu1 %v2570_v59, %s2004_s5  ;;  %641 = vrot.lane.b32.xlu0 %v2572_v39, %s2005_s21 }
 0x2bd   :  { %1435 = vrot.lane.b32.xlu0 %v2560_v58, %s2005_s21  ;;  %519 = vrot.lane.b32.xlu1 %v2572_v39, %s2004_s5  ;;  %s1759_s5 = sshll.u32 %s2008_s1, 4  ;;  %s1760_s5 = int_to_ptr.vmem [resolvable:$true] %s1759_s5 }
 0x2be   :  { %p1959_p6 = scmp.lt.s32.totalorder %s1760_s5, %s1760_s5 }
 0x2c1   :  { %1433 = vrot.lane.b32.xlu1 %v2570_v59, %s2005_s21 }
 0x2ef   :  { %v508_v22 = vpop.permute.xlu0 %507 }
 0x2f0   :  { %v524_v45 = vsel %vm140_vm1, %v508_v22, 0.0 }
 0x2f1   :  { %v572_v63 = vmul.f32 %v2314_v8, %v524_v45 }
 0x2f3   :  { %v1376_v46 = vpop.permute.xlu0 %1375  ;;  %v620_v27 = vadd.f32 %v612_v24, %v572_v63 }
 0x2f4   :  { %v1390_v61 = vsel %vm140_vm1, %v1376_v46, 0.0 }
 0x2f5   :  { %v1398_v38 = vmul.f32 %v1390_v61, %v2314_v8 }
 0x2f7   :  { %v630_v19 = vpop.permute.xlu0 %629  ;;  %v506_v55 = vpop.permute.xlu1 %505  ;;  %v1414_v24 = vadd.f32 %v1406_v50, %v1398_v38 }
 0x2f8   :  { %v646_v15 = vsel %vm145_vm2, %v630_v19, 0.0  ;;  %v523_v26 = vsel %vm140_vm1, %v506_v55, 0.0 }
 0x2f9   :  { %v686_v12 = vmul.f32 %v2336_v23, %v646_v15  ;;  %v571_v19 = vmul.f32 %v2307_v4, %v523_v26 }
 0x2fb   :  { %v694_v21 = vadd.f32 %v686_v12, %v620_v27  ;;  %v1378_v35 = vpop.permute.xlu0 %1377 }
 0x2fc   :  { %v1391_v63 = vsel %vm140_vm1, %v1378_v35, 0.0 }
 0x2fd   :  { %v742_v10 = vadd.f32 %v2346_v42, %v694_v21  ;;  %v1399_v60 = vmul.f32 %v1391_v63, %v2319_v13 }
 0x2ff   :  { %v1424_v2 = vpop.permute.xlu0 %1423  ;;  %v1374_v20 = vpop.permute.xlu1 %1373  ;;  %vm750_vm3 = vcmp.ge.f32.partialorder %v742_v10, 0.0  ;;  %v759_v17 = vmul.f32 %v2598_v14, %v742_v10 }
 0x300   :  { %v1438_v9 = vsel %vm145_vm2, %v1424_v2, 0.0  ;;  %v1389_v27 = vsel %vm140_vm1, %v1374_v20, 0.0 }
 0x301   :  { %v2607_v56 = vsel %vm750_vm3, %v742_v10, %v759_v17  ;;  %v1446_v22 = vmul.f32 %v1438_v9, %v2336_v23  ;;  %v611_v23 = vmul.f32 %v2309_v7, %v2479_v54  ;;  %v1407_v10 = vmul.f32 %v2486_v11, %v2329_v18  ;;  %v3011_v9 = vld [vmem:[#allocation11_spill] sm:$0xff] }
 0x302   :  { %776 = vadd.xlane.f32.xlu0 %v2607_v56  ;;  %v1397_v54 = vmul.f32 %v1389_v27, %v2307_v4  ;;  %v1405_v18 = vmul.f32 %v2491_v51, %v2309_v7  ;;  %vm2007_vm3 = vmmov 0  }
 0x303   :  { %v632_v45 = vpop.permute.xlu0 %631  ;;  %v510_v46 = vpop.permute.xlu1 %509  ;;  %v1454_v12 = vadd.f32 %v1446_v22, %v1414_v24  ;;  %v619_v20 = vadd.f32 %v611_v23, %v571_v19  ;;  %v1415_v50 = vadd.f32 %v1407_v10, %v1399_v60  ;;  %v3012_v19 = vld [vmem:[#allocation14_spill] sm:$0xff] }
 0x304   :  { %v525_v8 = vsel %vm140_vm1, %v510_v46, 0.0  ;;  %v647_v21 = vsel %vm145_vm2, %v632_v45, 0.0  ;;  %v1413_v4 = vadd.f32 %v1405_v18, %v1397_v54  ;;  %v3015_v54 = vld [vmem:[#allocation18_spill] sm:$0xff] }
 0x305   :  { %v573_v15 = vmul.f32 %v2319_v13, %v525_v8  ;;  %v3010_v13 = vld [vmem:[#allocation16_spill] sm:$0xff]  ;;  %v1462_v22 = vadd.f32 %v1454_v12, %v2346_v42 }
 0x306   :  { %v687_v26 = vmul.f32 %v3010_v13, %v647_v21 }
 0x307   :  { %v1426_v55 = vpop.permute.xlu0 %1425  ;;  %v628_v35 = vpop.permute.xlu1 %627  ;;  %v621_v61 = vadd.f32 %v613_v29, %v573_v15  ;;  %v3013_v29 = vld [vmem:[#allocation12_spill] sm:$0xff]  ;;  %vm1470_vm5 = vcmp.ge.f32.partialorder %v1462_v22, 0.0 }
 0x308   :  { %v1439_v2 = vsel %vm145_vm2, %v1426_v55, 0.0  ;;  %v645_v62 = vsel %vm145_vm2, %v628_v35, 0.0  ;;  %v614_v23 = vmul.f32 %v3013_v29, %v2509_v48  ;;  %v1478_v55 = vmul.f32 %v1462_v22, %v2598_v14 }
 0x309   :  { %v1447_v17 = vmul.f32 %v1439_v2, %v3010_v13  ;;  %v685_v38 = vmul.f32 %v3011_v9, %v645_v62  ;;  %v695_v63 = vadd.f32 %v687_v26, %v621_v61  ;;  %v3014_v61 = vld [vmem:[#allocation15_spill] sm:$0xff] }
 0x30a   :  { %v2671_v18 = vsel %vm1470_vm5, %v1462_v22, %v1478_v55 }
 0x30b   :  { %v693_v11 = vadd.f32 %v685_v38, %v619_v20  ;;  %v634_v45 = vpop.permute.xlu0 %633  ;;  %v1422_v46 = vpop.permute.xlu1 %1421  ;;  %v1455_v24 = vadd.f32 %v1447_v17, %v1415_v50  ;;  %v743_v35 = vadd.f32 %v2436_v16, %v695_v63  ;;  %v1408_v20 = vmul.f32 %v2516_v25, %v3013_v29 }
 0x30c   :  { %v1437_v8 = vsel %vm145_vm2, %v1422_v46, 0.0  ;;  %v648_v51 = vsel %vm145_vm2, %v634_v45, 0.0 }
 0x30d   :  { %v741_v15 = vadd.f32 %v3012_v19, %v693_v11  ;;  %v1445_v27 = vmul.f32 %v1437_v8, %v3011_v9  ;;  %v1463_v10 = vadd.f32 %v1455_v24, %v2436_v16  ;;  %v688_v13 = vmul.f32 %v3015_v54, %v648_v51 }
 0x30e   :  { %v760_v11 = vmul.f32 %v2598_v14, %v743_v35  ;;  %vm751_vm8 = vcmp.ge.f32.partialorder %v743_v35, 0.0 }
 0x30f   :  { %v1453_v42 = vadd.f32 %v1445_v27, %v1413_v4  ;;  %v1428_v60 = vpop.permute.xlu0 %1427  ;;  %v512_v12 = vpop.permute.xlu1 %511  ;;  %vm749_vm4 = vcmp.ge.f32.partialorder %v741_v15, 0.0  ;;  %v758_v7 = vmul.f32 %v2598_v14, %v741_v15  ;;  %v1479_v63 = vmul.f32 %v1463_v10, %v2598_v14  ;;  %v3016_v27 = vld [vmem:[#allocation17_spill] sm:$0xff] }
 0x310   :  { %v526_v21 = vsel %vm140_vm1, %v512_v12, 0.0  ;;  %v1440_v16 = vsel %vm145_vm2, %v1428_v60, 0.0  ;;  %vm1471_vm7 = vcmp.ge.f32.partialorder %v1463_v10, 0.0  ;;  %v615_v29 = vmul.f32 %v3016_v27, %v2523_v1  ;;  %v3017_v60 = vld [vmem:[#allocation13_spill] sm:$0xff] }
 0x311   :  { %v1461_v48 = vadd.f32 %v1453_v42, %v3012_v19  ;;  %v574_v2 = vmul.f32 %v3014_v61, %v526_v21  ;;  %v2659_v62 = vsel %vm749_vm4, %v741_v15, %v758_v7  ;;  %v1448_v8 = vmul.f32 %v1440_v16, %v3015_v54 }
 0x312   :  { %774 = vadd.xlane.f32.xlu1 %v2659_v62  ;;  %v2689_v7 = vsel %vm1471_vm7, %v1463_v10, %v1479_v63  ;;  %v2691_v51 = vsel %vm751_vm8, %v743_v35, %v760_v11  ;;  %vm1015_vm4 = vcmask 523264  }
 0x313   :  { %v622_v17 = vadd.f32 %v614_v23, %v574_v2  ;;  %v636_v9 = vpop.permute.xlu0 %635  ;;  %v1380_v38 = vpop.permute.xlu1 %1379  ;;  %vm1469_vm6 = vcmp.ge.f32.partialorder %v1461_v48, 0.0  ;;  %v1477_v26 = vmul.f32 %v1461_v48, %v2598_v14 }
 0x314   :  { %v1392_v50 = vsel %vm140_vm1, %v1380_v38, 0.0  ;;  %v649_v15 = vsel %vm145_vm2, %v636_v9, 0.0 }
 0x315   :  { %v696_v25 = vadd.f32 %v688_v13, %v622_v17  ;;  %v1400_v45 = vmul.f32 %v1392_v50, %v3014_v61  ;;  %v2675_v46 = vsel %vm1469_vm6, %v1461_v48, %v1477_v26  ;;  %v689_v55 = vmul.f32 %v2430_v49, %v649_v15 }
 0x316   :  { %1495 = vadd.xlane.f32.xlu1 %v2671_v18  ;;  %1493 = vadd.xlane.f32.xlu0 %v2675_v46  ;;  %v1409_v13 = vmul.f32 %v2530_v34, %v3016_v27 }
 0x317   :  { %v1416_v4 = vadd.f32 %v1408_v20, %v1400_v45  ;;  %v1430_v22 = vpop.permute.xlu0 %1429  ;;  %v514_v24 = vpop.permute.xlu1 %513  ;;  %v744_v19 = vadd.f32 %v2444_v33, %v696_v25  ;;  %v803_v20 = vmul.f32 %v2659_v62, %v2659_v62  ;;  %v1523_v45 = vmul.f32 %v2671_v18, %v2671_v18 }
 0x318   :  { %v527_v23 = vsel %vm140_vm1, %v514_v24, 0.0  ;;  %v1441_v10 = vsel %vm145_vm2, %v1430_v22, 0.0 }
 0x319   :  { %v1456_v42 = vadd.f32 %v1448_v8, %v1416_v4  ;;  %v575_v12 = vmul.f32 %v3017_v60, %v527_v23  ;;  %vm752_vm9 = vcmp.ge.f32.partialorder %v744_v19, 0.0  ;;  %v761_v21 = vmul.f32 %v2598_v14, %v744_v19 }
 0x31a   :  { %1497 = vadd.xlane.f32.xlu1 %v2689_v7  ;;  %778 = vadd.xlane.f32.xlu0 %v2691_v51  ;;  %v1449_v38 = vmul.f32 %v1441_v10, %v2430_v49  ;;  %v616_v8 = vmul.f32 %v2428_v0, %v2538_v47 }
 0x31b   :  { %v623_v1 = vadd.f32 %v615_v29, %v575_v12  ;;  %v638_v48 = vpop.permute.xlu0 %637  ;;  %v1382_v61 = vpop.permute.xlu1 %1381  ;;  %v1464_v2 = vadd.f32 %v1456_v42, %v2444_v33  ;;  %v2707_v9 = vsel %vm752_vm9, %v744_v19, %v761_v21  ;;  %v805_v42 = vmul.f32 %v2691_v51, %v2691_v51 }
 0x31c   :  { %v1393_v35 = vsel %vm140_vm1, %v1382_v61, 0.0  ;;  %v650_v34 = vsel %vm145_vm2, %v638_v48, 0.0  ;;  %v1410_v12 = vmul.f32 %v2545_v52, %v2428_v0 }
 0x31d   :  { %v697_v54 = vadd.f32 %v689_v55, %v623_v1  ;;  %v1401_v17 = vmul.f32 %v1393_v35, %v3017_v60  ;;  %vm1472_vm10 = vcmp.ge.f32.partialorder %v1464_v2, 0.0  ;;  %v1480_v33 = vmul.f32 %v1464_v2, %v2598_v14 }
 0x31e   :  { %811 = vadd.xlane.f32.xlu1 %v803_v20  ;;  %780 = vadd.xlane.f32.xlu0 %v2707_v9  ;;  %v690_v24 = vmul.f32 %v2438_v36, %v650_v34  ;;  %v806_v34 = vmul.f32 %v2707_v9, %v2707_v9 }
 0x31f   :  { %v1417_v26 = vadd.f32 %v1409_v13, %v1401_v17  ;;  %v1432_v16 = vpop.permute.xlu0 %1431  ;;  %v516_v50 = vpop.permute.xlu1 %515  ;;  %v745_v11 = vadd.f32 %v2452_v57, %v697_v54  ;;  %v2722_v4 = vsel %vm1472_vm10, %v1464_v2, %v1480_v33  ;;  %v1412_v2 = vmul.f32 %v2560_v58, %v2442_v5 }
 0x320   :  { %v528_v25 = vsel %vm140_vm1, %v516_v50, 0.0  ;;  %v1442_v47 = vsel %vm145_vm2, %v1432_v16, 0.0 }
 0x321   :  { %v1457_v63 = vadd.f32 %v1449_v38, %v1417_v26  ;;  %v576_v49 = vmul.f32 %v2432_v3, %v528_v25  ;;  %vm753_vm11 = vcmp.ge.f32.partialorder %v745_v11, 0.0  ;;  %v762_v22 = vmul.f32 %v2598_v14, %v745_v11 }
 0x322   :  { %1532 = vadd.xlane.f32.xlu1 %v1523_v45  ;;  %1499 = vadd.xlane.f32.xlu0 %v2722_v4  ;;  %v1450_v48 = vmul.f32 %v1442_v47, %v2438_v36  ;;  %v1524_v36 = vmul.f32 %v2689_v7, %v2689_v7 }
 0x323   :  { %v624_v19 = vadd.f32 %v616_v8, %v576_v49  ;;  %v640_v15 = vpop.permute.xlu0 %639  ;;  %v1384_v27 = vpop.permute.xlu1 %1383  ;;  %v1465_v29 = vadd.f32 %v1457_v63, %v2452_v57  ;;  %v2737_v55 = vsel %vm753_vm11, %v745_v11, %v762_v22  ;;  %v617_v57 = vmul.f32 %v2434_v32, %v2553_v28 }
 0x324   :  { %v1394_v23 = vsel %vm140_vm1, %v1384_v27, 0.0  ;;  %v651_v10 = vsel %vm145_vm2, %v640_v15, 0.0  ;;  %v618_v22 = vmul.f32 %v2442_v5, %v2572_v39 }
 0x325   :  { %v698_v60 = vadd.f32 %v690_v24, %v624_v19  ;;  %v1402_v21 = vmul.f32 %v1394_v23, %v2432_v3  ;;  %vm1473_vm12 = vcmp.ge.f32.partialorder %v1465_v29, 0.0  ;;  %v1481_v1 = vmul.f32 %v1465_v29, %v2598_v14 }
 0x326   :  { %815 = vadd.xlane.f32.xlu1 %v805_v42  ;;  %782 = vadd.xlane.f32.xlu0 %v2737_v55  ;;  %v691_v33 = vmul.f32 %v2446_v41, %v651_v10  ;;  %v1525_v24 = vmul.f32 %v2722_v4, %v2722_v4 }
 0x327   :  { %v1418_v61 = vadd.f32 %v1410_v12, %v1402_v21  ;;  %v1388_v0 = vpop.permute.xlu0 %1387  ;;  %v518_v52 = vpop.permute.xlu1 %517  ;;  %v746_v3 = vadd.f32 %v2456_v37, %v698_v60  ;;  %v2757_v13 = vsel %vm1473_vm12, %v1465_v29, %v1481_v1  ;;  %v1411_v60 = vmul.f32 %v2570_v59, %v2434_v32 }
 0x328   :  { %v1396_v35 = vsel %vm140_vm1, %v1388_v0, 0.0  ;;  %v529_v28 = vsel %vm140_vm1, %v518_v52, 0.0  ;;  %v807_v1 = vmul.f32 %v2737_v55, %v2737_v55  ;;  %v1526_v0 = vmul.f32 %v2757_v13, %v2757_v13 }
 0x329   :  { %v1458_v20 = vadd.f32 %v1450_v48, %v1418_v61  ;;  %v1404_v54 = vmul.f32 %v1396_v35, %v2448_v43  ;;  %v577_v58 = vmul.f32 %v2440_v40, %v529_v28  ;;  %vm754_vm13 = vcmp.ge.f32.partialorder %v746_v3, 0.0 }
 0x32a   :  { %1534 = vadd.xlane.f32.xlu1 %v1524_v36  ;;  %1501 = vadd.xlane.f32.xlu0 %v2757_v13  ;;  %v763_v17 = vmul.f32 %v2598_v14, %v746_v3  ;;  %v804_v36 = vmul.f32 %v2607_v56, %v2607_v56 }
 0x32b   :  { %v1420_v38 = vadd.f32 %v1412_v2, %v1404_v54  ;;  %v625_v26 = vadd.f32 %v617_v57, %v577_v58  ;;  %v642_v16 = vpop.permute.xlu0 %641  ;;  %v1386_v50 = vpop.permute.xlu1 %1385  ;;  %v1466_v11 = vadd.f32 %v1458_v20, %v2456_v37  ;;  %v1522_v20 = vmul.f32 %v2675_v46, %v2675_v46 }
 0x32c   :  { %v1395_v45 = vsel %vm140_vm1, %v1386_v50, 0.0  ;;  %v2767_v63 = vsel %vm754_vm13, %v746_v3, %v763_v17  ;;  %v652_v15 = vsel %vm145_vm2, %v642_v16, 0.0 }
 0x32d   :  { %v699_v25 = vadd.f32 %v691_v33, %v625_v26  ;;  %vm1474_vm14 = vcmp.ge.f32.partialorder %v1466_v11, 0.0  ;;  %v1482_v8 = vmul.f32 %v1466_v11, %v2598_v14  ;;  %v1403_v27 = vmul.f32 %v1395_v45, %v2440_v40 }
 0x32e   :  { %817 = vadd.xlane.f32.xlu1 %v806_v34  ;;  %784 = vadd.xlane.f32.xlu0 %v2767_v63  ;;  %v692_v40 = vmul.f32 %v2450_v53, %v652_v15 }
 0x32f   :  { %v1436_v49 = vpop.permute.xlu0 %1435  ;;  %v520_v37 = vpop.permute.xlu1 %519  ;;  %v747_v19 = vadd.f32 %v2454_v44, %v699_v25  ;;  %v2785_v39 = vsel %vm1474_vm14, %v1466_v11, %v1482_v8  ;;  %v1419_v57 = vadd.f32 %v1411_v60, %v1403_v27 }
 0x330   :  { %v1444_v29 = vsel %vm145_vm2, %v1436_v49, 0.0  ;;  %v530_v47 = vsel %vm140_vm1, %v520_v37, 0.0 }
 0x331   :  { %v1452_v23 = vmul.f32 %v1444_v29, %v2450_v53  ;;  %v578_v5 = vmul.f32 %v2448_v43, %v530_v47  ;;  %v764_v42 = vmul.f32 %v2598_v14, %v747_v19  ;;  %vm755_vm15 = vcmp.ge.f32.partialorder %v747_v19, 0.0 }
 0x332   :  { %1536 = vadd.xlane.f32.xlu1 %v1525_v24  ;;  %1503 = vadd.xlane.f32.xlu0 %v2785_v39 }
 0x333   :  { %v1460_v12 = vadd.f32 %v1452_v23, %v1420_v38  ;;  %v626_v30 = vadd.f32 %v618_v22, %v578_v5  ;;  %v1434_v21 = vpop.permute.xlu1 %1433  ;;  %v2798_v59 = vsel %vm755_vm15, %v747_v19, %v764_v42 }
 0x334   :  { %v1443_v43 = vsel %vm145_vm2, %v1434_v21, 0.0 }
 0x335   :  { %v1468_v48 = vadd.f32 %v1460_v12, %v2458_v31  ;;  %v700_v61 = vadd.f32 %v692_v40, %v626_v30  ;;  %v1451_v32 = vmul.f32 %v1443_v43, %v2446_v41 }
 0x336   :  { %819 = vadd.xlane.f32.xlu1 %v807_v1  ;;  %786 = vadd.xlane.f32.xlu0 %v2798_v59 }
 0x337   :  { %v1459_v53 = vadd.f32 %v1451_v32, %v1419_v57  ;;  %v748_v2 = vadd.f32 %v2458_v31, %v700_v61  ;;  %vm1476_vm0 = vcmp.ge.f32.partialorder %v1468_v48, 0.0  ;;  %v1484_v6 = vmul.f32 %v1468_v48, %v2598_v14 }
 0x338   :  { %v808_v31 = vmul.f32 %v2767_v63, %v2767_v63 }
 0x339   :  { %v1467_v52 = vadd.f32 %v1459_v53, %v2454_v44  ;;  %vm756_vm1 = vcmp.ge.f32.partialorder %v748_v2, 0.0  ;;  %v765_v3 = vmul.f32 %v2598_v14, %v748_v2  ;;  %v2807_v41 = vsel %vm1476_vm0, %v1468_v48, %v1484_v6 }
 0x33a   :  { %1538 = vadd.xlane.f32.xlu1 %v1526_v0  ;;  %v1527_v44 = vmul.f32 %v2785_v39, %v2785_v39  ;;  %v1529_v58 = vmul.f32 %v2807_v41, %v2807_v41 }
 0x33b   :  { %vm1475_vm2 = vcmp.ge.f32.partialorder %v1467_v52, 0.0  ;;  %v1483_v10 = vmul.f32 %v1467_v52, %v2598_v14  ;;  %v2810_v35 = vsel %vm756_vm1, %v748_v2, %v765_v3  ;;  %v809_v14 = vmul.f32 %v2798_v59, %v2798_v59 }
 0x33c   :  { %v810_v17 = vmul.f32 %v2810_v35, %v2810_v35 }
 0x33d   :  { %v2814_v28 = vsel %vm1475_vm2, %v1467_v52, %v1483_v10 }
 0x33e   :  { %821 = vadd.xlane.f32.xlu1 %v808_v31  ;;  %1505 = vadd.xlane.f32.xlu0 %v2814_v28  ;;  %v1528_v54 = vmul.f32 %v2814_v28, %v2814_v28 }
 0x342   :  { %1540 = vadd.xlane.f32.xlu1 %v1527_v44  ;;  %813 = vadd.xlane.f32.xlu0 %v804_v36 }
 0x346   :  { %823 = vadd.xlane.f32.xlu1 %v809_v14  ;;  %1530 = vadd.xlane.f32.xlu0 %v1522_v20 }
 0x34a   :  { %788 = vadd.xlane.f32.xlu0 %v2810_v35  ;;  %1542 = vadd.xlane.f32.xlu1 %v1528_v54 }
 0x34e   :  { %1507 = vadd.xlane.f32.xlu0 %v2807_v41  ;;  %1544 = vadd.xlane.f32.xlu1 %v1529_v58 }
 0x352   :  { %825 = vadd.xlane.f32.xlu0 %v810_v17 }
 0x38b   :  { %v777_v33 = vpop.xlane.xlu0 %776 }
 0x39b   :  { %v775_v38 = vpop.xlane.xlu1 %774 }
 0x39c   :  { %v790_v40 = vadd.f32 %v777_v33, %v775_v38 }
 0x39f   :  { %v1494_v26 = vpop.xlane.xlu0 %1493  ;;  %v1496_v16 = vpop.xlane.xlu1 %1495 }
 0x3a0   :  { %v1509_v57 = vadd.f32 %v1496_v16, %v1494_v26 }
 0x3a3   :  { %v779_v50 = vpop.xlane.xlu0 %778  ;;  %v1498_v11 = vpop.xlane.xlu1 %1497 }
 0x3a4   :  { %v791_v12 = vadd.f32 %v790_v40, %v779_v50  ;;  %v1510_v48 = vadd.f32 %v1509_v57, %v1498_v11 }
 0x3a7   :  { %v781_v34 = vpop.xlane.xlu0 %780  ;;  %v812_v25 = vpop.xlane.xlu1 %811 }
 0x3a8   :  { %v792_v43 = vadd.f32 %v791_v12, %v781_v34 }
 0x3ab   :  { %v1500_v45 = vpop.xlane.xlu0 %1499  ;;  %v1533_v8 = vpop.xlane.xlu1 %1532 }
 0x3ac   :  { %v1511_v6 = vadd.f32 %v1510_v48, %v1500_v45 }
 0x3af   :  { %v783_v49 = vpop.xlane.xlu0 %782  ;;  %v816_v22 = vpop.xlane.xlu1 %815 }
 0x3b0   :  { %v793_v61 = vadd.f32 %v792_v43, %v783_v49 }
 0x3b3   :  { %v1502_v37 = vpop.xlane.xlu0 %1501  ;;  %v1535_v24 = vpop.xlane.xlu1 %1534 }
 0x3b4   :  { %v1512_v10 = vadd.f32 %v1511_v6, %v1502_v37 }
 0x3b7   :  { %v785_v19 = vpop.xlane.xlu0 %784  ;;  %v818_v15 = vpop.xlane.xlu1 %817 }
 0x3b8   :  { %v794_v0 = vadd.f32 %v793_v61, %v785_v19 }
 0x3bb   :  { %v1537_v27 = vpop.xlane.xlu1 %1536  ;;  %v1504_v29 = vpop.xlane.xlu0 %1503 }
 0x3bc   :  { %v1513_v20 = vadd.f32 %v1512_v10, %v1504_v29 }
 0x3bf   :  { %v820_v47 = vpop.xlane.xlu1 %819  ;;  %v787_v23 = vpop.xlane.xlu0 %786 }
 0x3c0   :  { %v795_v31 = vadd.f32 %v794_v0, %v787_v23 }
 0x3c3   :  { %v1539_v5 = vpop.xlane.xlu1 %1538 }
 0x3c7   :  { %v1506_v42 = vpop.xlane.xlu0 %1505  ;;  %v822_v60 = vpop.xlane.xlu1 %821 }
 0x3c8   :  { %v1514_v33 = vadd.f32 %v1513_v20, %v1506_v42 }
 0x3cb   :  { %v814_v30 = vpop.xlane.xlu0 %813  ;;  %v1541_v21 = vpop.xlane.xlu1 %1540 }
 0x3cc   :  { %v827_v1 = vadd.f32 %v814_v30, %v812_v25 }
 0x3ce   :  { %v828_v32 = vadd.f32 %v827_v1, %v816_v22 }
 0x3cf   :  { %v1531_v53 = vpop.xlane.xlu0 %1530  ;;  %v824_v2 = vpop.xlane.xlu1 %823 }
 0x3d0   :  { %v829_v52 = vadd.f32 %v828_v32, %v818_v15  ;;  %v1546_v3 = vadd.f32 %v1533_v8, %v1531_v53 }
 0x3d2   :  { %v1547_v44 = vadd.f32 %v1546_v3, %v1535_v24  ;;  %v830_v36 = vadd.f32 %v829_v52, %v820_v47 }
 0x3d3   :  { %v789_v14 = vpop.xlane.xlu0 %788  ;;  %v1543_v17 = vpop.xlane.xlu1 %1542 }
 0x3d4   :  { %v1548_v54 = vadd.f32 %v1547_v44, %v1537_v27  ;;  %v796_v58 = vadd.f32 %v795_v31, %v789_v14  ;;  %v831_v38 = vadd.f32 %v830_v36, %v822_v60 }
 0x3d6   :  { %v797_v26 = vrot.slane %v796_v58, 4  ;;  %v1549_v16 = vadd.f32 %v1548_v54, %v1539_v5  ;;  %v832_v45 = vadd.f32 %v831_v38, %v824_v2 }
 0x3d7   :  { %v1508_v50 = vpop.xlane.xlu0 %1507  ;;  %v1545_v37 = vpop.xlane.xlu1 %1544 }
 0x3d8   :  { %v798_v11 = vadd.f32 %v797_v26, %v796_v58  ;;  %v1550_v34 = vadd.f32 %v1549_v16, %v1541_v21  ;;  %v1515_v25 = vadd.f32 %v1514_v33, %v1508_v50  ;;  %v100_v58 = vld [vmem:[%s2988_s8 + $0x38] sm:$0xff] }
 0x3da   :  { %v799_v49 = vrot.slane %v798_v11, 2  ;;  %v1551_v8 = vadd.f32 %v1550_v34, %v1543_v17  ;;  %v1516_v22 = vrot.slane %v1515_v25, 4  ;;  %v99_v17 = vld [vmem:[%s2988_s8 + $0x30] sm:$0xff]  ;;  %v98_v34 = vld [vmem:[%s2988_s8 + $0x28] sm:$0xff] }
 0x3db   :  { %v826_v24 = vpop.xlane.xlu0 %825 }
 0x3dc   :  { %v800_v19 = vadd.f32 %v799_v49, %v798_v11  ;;  %v1517_v15 = vadd.f32 %v1516_v22, %v1515_v25  ;;  %v1552_v29 = vadd.f32 %v1551_v8, %v1545_v37  ;;  %v833_v27 = vadd.f32 %v832_v45, %v826_v24  ;;  %v97_v25 = vld [vmem:[%s2988_s8 + $0x20] sm:$0xff]  ;;  %v96_v37 = vld [vmem:[%s2988_s8 + $0x18] sm:$0xff]  ;;  %v95_v24 = vld [vmem:[%s2988_s8 + $0x10] sm:$0xff] }
 0x3de   :  { %v801_v47 = vrot.slane %v800_v19, 1  ;;  %v1518_v23 = vrot.slane %v1517_v15, 2  ;;  %v1553_v42 = vrot.slane %v1552_v29, 4  ;;  %v834_v60 = vrot.slane %v833_v27, 4 }
 0x3e0   :  { %v1519_v40 = vadd.f32 %v1518_v23, %v1517_v15  ;;  %v1554_v5 = vadd.f32 %v1553_v42, %v1552_v29  ;;  %v835_v12 = vadd.f32 %v834_v60, %v833_v27  ;;  %v802_v30 = vadd.f32 %v801_v47, %v800_v19  ;;  %v94_v47 = vld [vmem:[%s2988_s8 + $0x8] sm:$0xff]  ;;  %v93_v23 = vld [vmem:[%s2988_s8] sm:$0xff] }
 0x3e2   :  { %v1520_v21 = vrot.slane %v1519_v40, 1  ;;  %v1555_v57 = vrot.slane %v1554_v5, 2  ;;  %v836_v43 = vrot.slane %v835_v12, 2  ;;  %v2833_v32 = vmul.f32 0.00012207031, %v802_v30 }
 0x3e4   :  { %v1521_v1 = vadd.f32 %v1520_v21, %v1519_v40  ;;  %v1556_v48 = vadd.f32 %v1555_v57, %v1554_v5  ;;  %v837_v61 = vadd.f32 %v836_v43, %v835_v12  ;;  %v842_v44 = vmul.f32 %v2833_v32, %v2833_v32  ;;  %v108_v21 = vld [vmem:[%s2989_s9 + $0x38] sm:$0xff]  ;;  %v107_v57 = vld [vmem:[%s2989_s9 + $0x30] sm:$0xff] }
 0x3e6   :  { %v2835_v53 = vmul.f32 0.00012207031, %v1521_v1  ;;  %v1557_v2 = vrot.slane %v1556_v48, 1  ;;  %v838_v6 = vrot.slane %v837_v61, 1 }
 0x3e8   :  { %v1558_v0 = vadd.f32 %v1557_v2, %v1556_v48  ;;  %v839_v52 = vadd.f32 %v838_v6, %v837_v61  ;;  %v1561_v3 = vmul.f32 %v2835_v53, %v2835_v53  ;;  %v2006_v2 = vmov 0.0  }
 0x3e9   :  { %1845 = vmatprep.subr.bf16.mxu1 %v2006_v2  ;;  %1875 = vmatprep.subr.bf16.mxu0 %v2006_v2 }
 0x3ea   :  { %v1560_v10 = vmul.f32 0.00012207031, %v1558_v0  ;;  %v841_v31 = vmul.f32 0.00012207031, %v839_v52  ;;  %1853 = vmatprep.mubr.msk.bf16.mxu1 %vm2007_vm3, %v2006_v2  ;;  %1883 = vmatprep.mubr.msk.bf16.mxu0 %vm2007_vm3, %v2006_v2 }
 0x3ec   :  { %v1562_v36 = vsub.f32 %v1560_v10, %v1561_v3  ;;  %v843_v14 = vsub.f32 %v841_v31, %v842_v44  ;;  %v106_v10 = vld [vmem:[%s2989_s9 + $0x28] sm:$0xff]  ;;  %v105_v31 = vld [vmem:[%s2989_s9 + $0x20] sm:$0xff] }
 0x3ee   :  { %v844_v20 = vadd.f32 1e-08, %v843_v14  ;;  %v1563_v54 = vadd.f32 1e-08, %v1562_v36 }
 0x3f0   :  { %1938 = vrsqrt.f32 %v844_v20 }
 0x3f1   :  { %1940 = vrsqrt.f32 %v1563_v54 }
 0x3fd   :  { %v1939_v33 = vpop.eup %1938 }
 0x3fe   :  { %v853_v38 = vmul.f32 %v1939_v33, %v100_v58  ;;  %v852_v26 = vmul.f32 %v1939_v33, %v99_v17  ;;  %v1941_v16 = vpop.eup %1940  ;;  %v851_v45 = vmul.f32 %v1939_v33, %v98_v34  ;;  %v850_v49 = vmul.f32 %v1939_v33, %v97_v25 }
 0x3ff   :  { %v1572_v50 = vmul.f32 %v1941_v16, %v100_v58  ;;  %v1571_v11 = vmul.f32 %v1941_v16, %v99_v17  ;;  %v1570_v8 = vmul.f32 %v1941_v16, %v98_v34  ;;  %v1569_v22 = vmul.f32 %v1941_v16, %v97_v25 }
 0x400   :  { %907 = vperm.xlu1 %1926, %v853_v38   ;;  %902 = vperm.xlu0 %1915, %v852_v26   ;;  %v849_v19 = vmul.f32 %v1939_v33, %v96_v37  ;;  %v848_v15 = vmul.f32 %v1939_v33, %v95_v24  ;;  %v1568_v29 = vmul.f32 %v1941_v16, %v96_v37  ;;  %v101_v37 = vld [vmem:[%s2989_s9] sm:$0xff] }
 0x401   :  { %v1567_v27 = vmul.f32 %v1941_v16, %v95_v24  ;;  %v847_v42 = vmul.f32 %v1939_v33, %v94_v47  ;;  %v846_v60 = vmul.f32 %v1939_v33, %v93_v23  ;;  %v1566_v40 = vmul.f32 %v1941_v16, %v94_v47  ;;  %v132_v47 = vld [vmem:[%s2991_s11 + $0x8] sm:$0xff] }
 0x402   :  { %v1565_v5 = vmul.f32 %v1941_v16, %v93_v23  ;;  %v861_v12 = vmul.f32 %v853_v38, %v2833_v32  ;;  %v860_v30 = vmul.f32 %v852_v26, %v2833_v32  ;;  %v1580_v43 = vmul.f32 %v1572_v50, %v2835_v53  ;;  %v104_v38 = vld [vmem:[%s2989_s9 + $0x18] sm:$0xff]  ;;  %v103_v26 = vld [vmem:[%s2989_s9 + $0x10] sm:$0xff] }
 0x403   :  { %v1579_v61 = vmul.f32 %v1571_v11, %v2835_v53  ;;  %v859_v52 = vmul.f32 %v851_v45, %v2833_v32  ;;  %v858_v3 = vmul.f32 %v850_v49, %v2833_v32  ;;  %v1578_v14 = vmul.f32 %v1570_v8, %v2835_v53  ;;  %v134_v23 = vld [vmem:[%s2991_s11 + $0x18] sm:$0xff] }
 0x404   :  { %1626 = vperm.xlu0 %1915, %v1572_v50   ;;  %1621 = vperm.xlu1 %1926, %v1571_v11   ;;  %v869_v1 = vsub.f32 %v108_v21, %v861_v12  ;;  %v868_v48 = vsub.f32 %v107_v57, %v860_v30  ;;  %v1588_v6 = vsub.f32 %v108_v21, %v1580_v43 }
 0x405   :  { %v1587_v0 = vsub.f32 %v107_v57, %v1579_v61  ;;  %v867_v44 = vsub.f32 %v106_v10, %v859_v52  ;;  %v866_v36 = vsub.f32 %v105_v31, %v858_v3  ;;  %v1577_v20 = vmul.f32 %v1569_v22, %v2835_v53 }
 0x406   :  { %v1586_v54 = vsub.f32 %v106_v10, %v1578_v14  ;;  %v857_v17 = vmul.f32 %v849_v19, %v2833_v32  ;;  %v856_v33 = vmul.f32 %v848_v15, %v2833_v32  ;;  %v1576_v11 = vmul.f32 %v1568_v29, %v2835_v53 }
 0x407   :  { %v1585_v58 = vsub.f32 %v105_v31, %v1577_v20  ;;  %v1575_v34 = vmul.f32 %v1567_v27, %v2835_v53 }
 0x408   :  { %897 = vperm.xlu0 %1915, %v851_v45   ;;  %892 = vperm.xlu1 %1926, %v850_v49   ;;  %v865_v16 = vsub.f32 %v104_v38, %v857_v17  ;;  %v864_v50 = vsub.f32 %v103_v26, %v856_v33  ;;  %v1584_v25 = vsub.f32 %v104_v38, %v1576_v11 }
 0x409   :  { %v1583_v45 = vsub.f32 %v103_v26, %v1575_v34  ;;  %v855_v49 = vmul.f32 %v847_v42, %v2833_v32 }
 0x40c   :  { %1616 = vperm.xlu0 %1915, %v1570_v8   ;;  %1611 = vperm.xlu1 %1926, %v1569_v22   ;;  %v854_v8 = vmul.f32 %v846_v60, %v2833_v32  ;;  %v102_v22 = vld [vmem:[%s2989_s9 + $0x8] sm:$0xff] }
 0x40d   :  { %v863_v24 = vsub.f32 %v102_v22, %v855_v49 }
 0x410   :  { %887 = vperm.xlu0 %1915, %v849_v19   ;;  %882 = vperm.xlu1 %1926, %v848_v15   ;;  %v862_v19 = vsub.f32 %v101_v37, %v854_v8  ;;  %v1574_v15 = vmul.f32 %v1566_v40, %v2835_v53 }
 0x414   :  { %1606 = vperm.xlu0 %1915, %v1568_v29   ;;  %1601 = vperm.xlu1 %1926, %v1567_v27   ;;  %v1573_v29 = vmul.f32 %v1565_v5, %v2835_v53  ;;  %v1582_v27 = vsub.f32 %v102_v22, %v1574_v15  ;;  %v131_v53 = vld [vmem:[%s2991_s11] sm:$0xff] }
 0x416   :  { %v1581_v32 = vsub.f32 %v101_v37, %v1573_v29 }
 0x418   :  { %877 = vperm.xlu0 %1915, %v847_v42   ;;  %872 = vperm.xlu1 %1926, %v846_v60   ;;  %v133_v42 = vld [vmem:[%s2991_s11 + $0x10] sm:$0xff]  ;;  %v136_v60 = vld [vmem:[%s2991_s11 + $0x28] sm:$0xff] }
 0x41c   :  { %1596 = vperm.xlu0 %1915, %v1566_v40   ;;  %1591 = vperm.xlu1 %1926, %v1565_v5   ;;  %v135_v40 = vld [vmem:[%s2991_s11 + $0x20] sm:$0xff] }
 0x420   :  { %955 = vperm.xlu0 %1915, %v869_v1   ;;  %950 = vperm.xlu1 %1926, %v868_v48  }
 0x424   :  { %1674 = vperm.xlu0 %1915, %v1588_v6   ;;  %1669 = vperm.xlu1 %1926, %v1587_v0  }
 0x428   :  { %945 = vperm.xlu0 %1915, %v867_v44   ;;  %940 = vperm.xlu1 %1926, %v866_v36  }
 0x42c   :  { %1664 = vperm.xlu0 %1915, %v1586_v54   ;;  %1659 = vperm.xlu1 %1926, %v1585_v58  }
 0x430   :  { %935 = vperm.xlu0 %1915, %v865_v16   ;;  %930 = vperm.xlu1 %1926, %v864_v50  }
 0x434   :  { %1654 = vperm.xlu0 %1915, %v1584_v25   ;;  %1649 = vperm.xlu1 %1926, %v1583_v45  }
 0x438   :  { %925 = vperm.xlu0 %1915, %v863_v24   ;;  %920 = vperm.xlu1 %1926, %v862_v19  }
 0x43c   :  { %1644 = vperm.xlu0 %1915, %v1582_v27   ;;  %1639 = vperm.xlu1 %1926, %v1581_v32  }
 0x440   :  { %977 = vperm.xlu0 %1915, %v132_v47   ;;  %972 = vperm.xlu1 %1926, %v131_v53  }
 0x444   :  { %987 = vperm.xlu0 %1915, %v134_v23   ;;  %982 = vperm.xlu1 %1926, %v133_v42  }
 0x448   :  { %997 = vperm.xlu0 %1915, %v136_v60   ;;  %992 = vperm.xlu1 %1926, %v135_v40  }
 0x47b   :  { %v903_v5 = vpop.permute.xlu0 %902  ;;  %v908_v12 = vpop.permute.xlu1 %907 }
 0x47c   :  { %v916_v36 = vmul.f32 %v903_v5, %v2798_v59  ;;  %v917_v14 = vmul.f32 %v908_v12, %v2810_v35 }
 0x47f   :  { %v1627_v30 = vpop.permute.xlu0 %1626  ;;  %v1622_v21 = vpop.permute.xlu1 %1621 }
 0x480   :  { %v1636_v33 = vmul.f32 %v1627_v30, %v2807_v41  ;;  %v1635_v38 = vmul.f32 %v1622_v21, %v2814_v28 }
 0x483   :  { %v898_v57 = vpop.permute.xlu0 %897  ;;  %v893_v43 = vpop.permute.xlu1 %892 }
 0x484   :  { %v915_v59 = vmul.f32 %v898_v57, %v2767_v63  ;;  %v914_v35 = vmul.f32 %v893_v43, %v2737_v55 }
 0x487   :  { %v1617_v1 = vpop.permute.xlu0 %1616  ;;  %v1612_v48 = vpop.permute.xlu1 %1611 }
 0x488   :  { %v1634_v41 = vmul.f32 %v1617_v1, %v2785_v39  ;;  %v1633_v28 = vmul.f32 %v1612_v48, %v2757_v13 }
 0x48b   :  { %v888_v61 = vpop.permute.xlu0 %887  ;;  %v883_v6 = vpop.permute.xlu1 %882 }
 0x48c   :  { %v913_v55 = vmul.f32 %v888_v61, %v2707_v9  ;;  %v912_v63 = vmul.f32 %v883_v6, %v2691_v51 }
 0x48f   :  { %v1607_v0 = vpop.permute.xlu0 %1606  ;;  %v1602_v52 = vpop.permute.xlu1 %1601 }
 0x490   :  { %v1632_v13 = vmul.f32 %v1607_v0, %v2722_v4  ;;  %v1631_v39 = vmul.f32 %v1602_v52, %v2689_v7 }
 0x493   :  { %v878_v3 = vpop.permute.xlu0 %877  ;;  %v873_v10 = vpop.permute.xlu1 %872 }
 0x494   :  { %v911_v51 = vmul.f32 %v878_v3, %v2607_v56  ;;  %v910_v9 = vmul.f32 %v873_v10, %v2659_v62  ;;  %v1931_v56 = vld [vmem:[%s2990_s10] sm:$0xff]  }
 0x497   :  { %v1597_v31 = vpop.permute.xlu0 %1596  ;;  %v1592_v44 = vpop.permute.xlu1 %1591 }
 0x498   :  { %v1630_v7 = vmul.f32 %v1597_v31, %v2671_v18  ;;  %v1629_v4 = vmul.f32 %v1592_v44, %v2675_v46  ;;  %v1932_v18 = vld [vmem:[%s2990_s10 + $0x8] sm:$0xff]   ;;  %v1933_v46 = vld [vmem:[%s2990_s10 + $0x10] sm:$0xff]   ;;  %s1954_s10 = scalar_lea.vmem %s1760_s5, 512 }
 0x499   :  { %p1955_p5 = scmp.ne.s32.totalorder %s1760_s5, %s1954_s10  ;;  %p1960_p7 = scmp.lt.s32.totalorder %s1954_s10, %s1954_s10 }
 0x49b   :  { %v956_v20 = vpop.permute.xlu0 %955  ;;  %v951_v54 = vpop.permute.xlu1 %950  ;;  %p1961_p8 = por %p1960_p7, %p1959_p6 }
 0x49c   :  { %v965_v58 = vadd.f32 %v956_v20, %v917_v14  ;;  %v964_v17 = vadd.f32 %v951_v54, %v916_v36 }
 0x49d   :  { %p1962_p9 = pnand %p1961_p8, %p1955_p5 }
 0x49e   :  { %v969_v26 = vpack.c.bf16 %v965_v58, %v964_v17 }
 0x49f   :  { %v1675_v16 = vpop.permute.xlu0 %1674  ;;  %v1670_v50 = vpop.permute.xlu1 %1669 }
 0x4a0   :  { %v1684_v11 = vadd.f32 %v1675_v16, %v1636_v33  ;;  %v1683_v34 = vadd.f32 %v1670_v50, %v1635_v38  ;;  %1846 = vmatpush3.bf16.msra.mxu1 %v969_v26 }
 0x4a1   :  { %1847 = vmatprep.subr.bf16.mxu1 %v2006_v2 }
 0x4a2   :  { %v1688_v25 = vpack.c.bf16 %v1684_v11, %v1683_v34 }
 0x4a3   :  { %v946_v45 = vpop.permute.xlu0 %945  ;;  %v941_v49 = vpop.permute.xlu1 %940 }
 0x4a4   :  { %v963_v8 = vadd.f32 %v946_v45, %v915_v59  ;;  %v962_v22 = vadd.f32 %v941_v49, %v914_v35  ;;  %1876 = vmatpush3.bf16.msra.mxu0 %v1688_v25 }
 0x4a5   :  { %1877 = vmatprep.subr.bf16.mxu0 %v2006_v2 }
 0x4a6   :  { %v968_v37 = vpack.c.bf16 %v963_v8, %v962_v22 }
 0x4a7   :  { %v1665_v24 = vpop.permute.xlu0 %1664  ;;  %v1660_v19 = vpop.permute.xlu1 %1659 }
 0x4a8   :  { %v1682_v15 = vadd.f32 %v1665_v24, %v1634_v41  ;;  %v1681_v29 = vadd.f32 %v1660_v19, %v1633_v28  ;;  %1848 = vmatpush3.bf16.msra.mxu1 %v968_v37 }
 0x4a9   :  { %1849 = vmatprep.subr.bf16.mxu1 %v2006_v2 }
 0x4aa   :  { %v1687_v27 = vpack.c.bf16 %v1682_v15, %v1681_v29 }
 0x4ab   :  { %v936_v32 = vpop.permute.xlu0 %935  ;;  %v931_v47 = vpop.permute.xlu1 %930 }
 0x4ac   :  { %v961_v53 = vadd.f32 %v936_v32, %v913_v55  ;;  %v960_v23 = vadd.f32 %v931_v47, %v912_v63  ;;  %1878 = vmatpush3.bf16.msra.mxu0 %v1687_v27 }
 0x4ad   :  { %1879 = vmatprep.subr.bf16.mxu0 %v2006_v2 }
 0x4ae   :  { %v967_v42 = vpack.c.bf16 %v961_v53, %v960_v23 }
 0x4af   :  { %v1655_v60 = vpop.permute.xlu0 %1654  ;;  %v1650_v40 = vpop.permute.xlu1 %1649 }
 0x4b0   :  { %v1680_v5 = vadd.f32 %v1655_v60, %v1632_v13  ;;  %v1679_v12 = vadd.f32 %v1650_v40, %v1631_v39  ;;  %1850 = vmatpush3.bf16.msra.mxu1 %v967_v42 }
 0x4b1   :  { %1851 = vmatprep.subr.bf16.mxu1 %v2006_v2 }
 0x4b2   :  { %v1686_v30 = vpack.c.bf16 %v1680_v5, %v1679_v12 }
 0x4b3   :  { %v926_v21 = vpop.permute.xlu0 %925  ;;  %v921_v57 = vpop.permute.xlu1 %920 }
 0x4b4   :  { %v959_v43 = vadd.f32 %v926_v21, %v911_v51  ;;  %v958_v1 = vadd.f32 %v921_v57, %v910_v9  ;;  %1880 = vmatpush3.bf16.msra.mxu0 %v1686_v30 }
 0x4b5   :  { %1881 = vmatprep.subr.bf16.mxu0 %v2006_v2 }
 0x4b6   :  { %v966_v48 = vpack.c.bf16 %v959_v43, %v958_v1 }
 0x4b7   :  { %v1645_v61 = vpop.permute.xlu0 %1644  ;;  %v1640_v6 = vpop.permute.xlu1 %1639 }
 0x4b8   :  { %v1678_v62 = vadd.f32 %v1645_v61, %v1630_v7  ;;  %v1677_v0 = vadd.f32 %v1640_v6, %v1629_v4  ;;  %1852 = vmatpush3.bf16.msra.mxu1 %v966_v48 }
 0x4ba   :  { %v1685_v52 = vpack.c.bf16 %v1678_v62, %v1677_v0 }
 0x4bb   :  { %1854 = vmatmul.mubr.msk.bf16.vlgmr.msra.gmra.mxu1 %vm1015_vm4, %v1931_v56  ;;  %v973_v3 = vpop.permute.xlu1 %972  ;;  %v978_v36 = vpop.permute.xlu0 %977 }
 0x4bc   :  { %1882 = vmatpush3.bf16.msra.mxu0 %v1685_v52  ;;  %1857 = vmatprep.mubr.msk.bf16.mxu1 %vm2007_vm3, %v2006_v2 }
 0x4bf   :  { %1884 = vmatmul.mubr.msk.bf16.vlgmr.msra.gmra.mxu0 %vm1015_vm4, %v1931_v56  ;;  %v983_v38 = vpop.permute.xlu1 %982  ;;  %v988_v59 = vpop.permute.xlu0 %987 }
 0x4c0   :  { %1887 = vmatprep.mubr.msk.bf16.mxu0 %vm2007_vm3, %v2006_v2 }
 0x4c3   :  { %1858 = vmatmul.mubr.msk.bf16.gmra.mxu1 %vm1015_vm4, %v1932_v18 }
 0x4c4   :  { %1861 = vmatprep.mubr.msk.bf16.mxu1 %vm2007_vm3, %v2006_v2 }
 0x4c7   :  { %1888 = vmatmul.mubr.msk.bf16.gmra.mxu0 %vm1015_vm4, %v1932_v18 }
 0x4c8   :  { %1891 = vmatprep.mubr.msk.bf16.mxu0 %vm2007_vm3, %v2006_v2 }
 0x4cb   :  { %1862 = vmatmul.mubr.msk.bf16.gmra.mxu1 %vm1015_vm4, %v1933_v46 }
 0x4cf   :  { %1892 = vmatmul.mubr.msk.bf16.gmra.mxu0 %vm1015_vm4, %v1933_v46 }
 0x57b   :  { %v1059_v10 = vpop.f32.mrf.mxu1 }
 0x57c   :  { %v1060_v31 = vadd.f32 %v1059_v10, %v973_v3 }
 0x57d   :  { %v1855_v44 = vpop.f32.mrf.mxu1 }
 0x57e   :  { %1082 = vst [vmem:[#allocation5] sm:$0xff] %v1060_v31 }
 0x57f   :  { %v1062_v14 = vpop.f32.mrf.mxu1  ;;  %v1723_v20 = vpop.f32.mrf.mxu0 }
 0x580   :  { %v1063_v54 = vadd.f32 %v1062_v14, %v978_v36  ;;  %v1724_v58 = vadd.f32 %v1723_v20, %v973_v3 }
 0x581   :  { %v1856_v17 = vpop.f32.mrf.mxu1  ;;  %v1885_v33 = vpop.f32.mrf.mxu0 }
 0x582   :  { %1083 = vst [vmem:[#allocation5 + $0x8] sm:$0xff] %v1063_v54  ;;  %1747 = vst [vmem:[#allocation5 + $0x10] sm:$0xff] %v1724_v58 }
 0x583   :  { %v1067_v2 = vpop.f32.mrf.mxu1  ;;  %v1726_v26 = vpop.f32.mrf.mxu0 }
 0x584   :  { %v1068_v16 = vadd.f32 %v1067_v2, %v983_v38  ;;  %v1727_v50 = vadd.f32 %v1726_v26, %v978_v36 }
 0x585   :  { %v1859_v11 = vpop.f32.mrf.mxu1  ;;  %v1886_v34 = vpop.f32.mrf.mxu0 }
 0x586   :  { %1084 = vst [vmem:[#allocation6] sm:$0xff] %v1068_v16  ;;  %1748 = vst [vmem:[#allocation5 + $0x18] sm:$0xff] %v1727_v50 }
 0x587   :  { %v1070_v35 = vpop.f32.mrf.mxu1  ;;  %v1731_v25 = vpop.f32.mrf.mxu0 }
 0x588   :  { %1965 = shalt.err (!%p1962_p9)
}
 0x589   :  { %s2009_s21 = smov 128   ;;  %s2010_s22 = smov 8   ;;  %v1071_v45 = vadd.f32 %v1070_v35, %v988_v59  ;;  %v1732_v49 = vadd.f32 %v1731_v25, %v983_v38  ;;  %v1860_v8 = vpop.f32.mrf.mxu1  ;;  %v1889_v22 = vpop.f32.mrf.mxu0 }
 0x58a   :  { %1765 = dma.vmem_to_hbm [thread:$0]  %s1760_s5, 512, %s2992_s12, [#allocation3], %s2009_s21, %s2009_s21, %s2010_s22   ;;  %v993_v41 = vpop.permute.xlu1 %992  ;;  %v998_v55 = vpop.permute.xlu0 %997 }
 0x58b   :  { %1085 = vst [vmem:[#allocation6 + $0x8] sm:$0xff] %v1071_v45  ;;  %1750 = vst [vmem:[#allocation6 + $0x20] sm:$0xff] %v1732_v49  ;;  %v1075_v28 = vpop.f32.mrf.mxu1  ;;  %v1734_v37 = vpop.f32.mrf.mxu0  ;;  %s2011_s12 = smov [#allocation6]  }
 0x58c   :  { %v1076_v24 = vadd.f32 %v1075_v28, %v993_v41  ;;  %v1735_v19 = vadd.f32 %v1734_v37, %v988_v59  ;;  %s1771_s0 = sshll.u32 %s2011_s12, 4  ;;  %s1772_s0 = int_to_ptr.vmem [resolvable:$true] %s1771_s0 }
 0x58d   :  { %v1863_v15 = vpop.f32.mrf.mxu1  ;;  %v1890_v29 = vpop.f32.mrf.mxu0  ;;  %s1974_s24 = scalar_lea.vmem %s1772_s0, 1024  ;;  %p1979_p11 = scmp.lt.s32.totalorder %s1772_s0, %s1772_s0 }
 0x58e   :  { %1086 = vst [vmem:[#allocation6 + $0x10] sm:$0xff] %v1076_v24  ;;  %1751 = vst [vmem:[#allocation6 + $0x28] sm:$0xff] %v1735_v19  ;;  %p1975_p10 = scmp.ne.s32.totalorder %s1772_s0, %s1974_s24  ;;  %p1980_p12 = scmp.lt.s32.totalorder %s1974_s24, %s1974_s24 }
 0x58f   :  { %v1078_v63 = vpop.f32.mrf.mxu1  ;;  %v1739_v27 = vpop.f32.mrf.mxu0 }
 0x590   :  { %v1079_v32 = vadd.f32 %v1078_v63, %v998_v55  ;;  %v1740_v47 = vadd.f32 %v1739_v27, %v993_v41  ;;  %p1981_p13 = por %p1980_p12, %p1979_p11 }
 0x591   :  { %v1864_v53 = vpop.f32.mrf.mxu1  ;;  %v1893_v23 = vpop.f32.mrf.mxu0 }
 0x592   :  { %1087 = vst [vmem:[#allocation6 + $0x18] sm:$0xff] %v1079_v32  ;;  %1752 = vst [vmem:[#allocation6 + $0x30] sm:$0xff] %v1740_v47  ;;  %p1982_p0 = pnand %p1981_p13, %p1975_p10 }
 0x593   :  { %v1742_v13 = vpop.f32.mrf.mxu0 }
 0x594   :  { %v1743_v39 = vadd.f32 %v1742_v13, %v998_v55 }
 0x595   :  { %v1894_v42 = vpop.f32.mrf.mxu0 }
 0x596   :  { %1753 = vst [vmem:[#allocation6 + $0x38] sm:$0xff] %v1743_v39 }
 0x597   :  { %1985 = shalt.err (!%p1982_p0)
}
 0x598   :  { %1777 = dma.vmem_to_hbm [thread:$0]  %s1772_s0, 1024, %s2993_s13, [#allocation7], %s2009_s21, %s2009_s21, %s2010_s22  }
 0x599   :  { %1996 = dma.done.wait [#allocation3], 512  }
 0x59a   :  { %1997 = vsyncadd [#allocation3], 4294966784 }
 0x59b   :  { %1998 = dma.done.wait [#allocation7], 1024  }
 0x59c   :  { %1999 = vsyncadd [#allocation7], 4294966272 }
 0x59d   :  { %1784 = vsyncpa [#allocation3], 1 }
 0x59e   :  { %1785 = vsyncpa [#allocation7], 1 }
 0x59f   :  { %1786 = vsyncpa [#allocation4], 1 }

</bundles_post_ra>
